<compile_context>
chip_gen: v5e
topology: v5e:2x2
jax: 0.10.0
libtpu: 0.0.40
codegen_flags: <defaults>
</compile_context>

<pallas_src>
import numpy as np

import jax
import jax.numpy as jnp
from jax import lax
from jax.experimental import pallas as pl
from jax.experimental.pallas import tpu as pltpu

# TODO(synk): torch.float16 replaced with bfloat16 (TPU-native 16-bit dtype).
DTYPE = jnp.bfloat16

_VMEM_LIMIT = 32 * 1024 * 1024  # scoped-VMEM budget safe on v5e / v6e / v7x (64 MiB phys)


def _fit_tile(dim, pref, unit):
    """Largest tile <= pref that divides `dim` and is a multiple of `unit`
    (falls back to the full dim, which is always a legal block size).  Only
    exact divisors (or the full dim) are returned, so every grid below uses
    exact division and no work is silently dropped."""
    if dim <= pref:
        return dim
    t = (pref // unit) * unit
    while t >= unit:
        if dim % t == 0:
            return t
        t -= unit
    return dim


# ----------------------------------------------------------------------------
# Kernels 1 & 4: tiled matmul (bf16 operands, f32 MXU accumulation).
# Grid = (M tiles, N tiles, K tiles); K innermost + resident f32 accumulator.
# ----------------------------------------------------------------------------
def _matmul_bias_kernel(x_ref, w_ref, b_ref, o_ref, acc_ref):
    @pl.when(pl.program_id(2) == 0)
    def _init():
        acc_ref[...] = jnp.zeros_like(acc_ref)

    acc_ref[...] += jnp.dot(x_ref[...], w_ref[...],
                            preferred_element_type=jnp.float32)

    @pl.when(pl.program_id(2) == pl.num_programs(2) - 1)
    def _finalize():
        acc = acc_ref[...] + b_ref[...].astype(jnp.float32)
        o_ref[...] = acc.astype(o_ref.dtype)


def _matmul_kernel(x_ref, w_ref, o_ref, acc_ref):
    @pl.when(pl.program_id(2) == 0)
    def _init():
        acc_ref[...] = jnp.zeros_like(acc_ref)

    acc_ref[...] += jnp.dot(x_ref[...], w_ref[...],
                            preferred_element_type=jnp.float32)

    @pl.when(pl.program_id(2) == pl.num_programs(2) - 1)
    def _finalize():
        o_ref[...] = acc_ref[...].astype(o_ref.dtype)


def tiled_matmul(x, w_t, bias=None, *, tm=512, tn=512, tk=1024):
    """x:(N,K) @ w_t:(K,Nout) [+ bias:(1,Nout)] -> (N,Nout) in DTYPE.

    Large default tiles (fewer grid steps, full-width MXU passes); working set
    at 512/512/1024 is ~7 MiB incl. double buffering -> fits every generation.
    """
    n, kdim = x.shape
    nout = w_t.shape[1]
    tm = _fit_tile(n, tm, 16)       # bf16 packs 16 rows per sublane group
    tn = _fit_tile(nout, tn, 128)
    tk = _fit_tile(kdim, tk, 128)
    grid = (n // tm, nout // tn, kdim // tk)

    in_specs = [
        pl.BlockSpec((tm, tk), lambda i, j, k: (i, k)),
        pl.BlockSpec((tk, tn), lambda i, j, k: (k, j)),
    ]
    args = [x, w_t]
    if bias is not None:
        in_specs.append(pl.BlockSpec((1, tn), lambda i, j, k: (0, j)))
        args.append(bias)
        kernel = _matmul_bias_kernel
    else:
        kernel = _matmul_kernel

    return pl.pallas_call(
        kernel,
        out_shape=jax.ShapeDtypeStruct((n, nout), DTYPE),
        grid=grid,
        in_specs=in_specs,
        out_specs=pl.BlockSpec((tm, tn), lambda i, j, k: (i, j)),
        scratch_shapes=[pltpu.VMEM((tm, tn), jnp.float32)],
        compiler_params=pltpu.CompilerParams(
            dimension_semantics=("parallel", "parallel", "arbitrary"),
            vmem_limit_bytes=_VMEM_LIMIT),
    )(*args)


# ----------------------------------------------------------------------------
# Kernel 2: RoPE(K) pre-pass.  Reads the K lanes directly out of the fused qkv
# buffer (no XLA slice copy) and writes rotated K once, so the flash kernel
# never recomputes K RoPE and never fetches cos/sin for K.
# ----------------------------------------------------------------------------
def _rope_k_kernel(k_ref, cos_ref, sin_ref, o_ref):
    k = k_ref[0].astype(jnp.float32)                  # (ts, dh)
    c = cos_ref[...].astype(jnp.float32)
    s = sin_ref[...].astype(jnp.float32)              # sign-folded sin
    half = k.shape[-1] // 2
    o_ref[0] = (k * c + pltpu.roll(k, shift=half, axis=1) * s).astype(o_ref.dtype)


def rope_rotate_k(qkv3d, cos_f, sin_signed_f, *, num_q_heads, num_kv_heads,
                  head_dim, block_s=512):
    b, s, _ = qkv3d.shape
    ts = _fit_tile(s, block_s, 16)
    kd = num_kv_heads * head_dim
    grid = (b, s // ts, num_kv_heads)
    return pl.pallas_call(
        _rope_k_kernel,
        out_shape=jax.ShapeDtypeStruct((b, s, kd), DTYPE),
        grid=grid,
        in_specs=[
            # K columns of kv head hi live at lane-block (num_q_heads + hi).
            pl.BlockSpec((1, ts, head_dim),
                         lambda bi, si, hi: (bi, si, num_q_heads + hi)),
            pl.BlockSpec((ts, head_dim), lambda bi, si, hi: (si, 0)),
            pl.BlockSpec((ts, head_dim), lambda bi, si, hi: (si, 0)),
        ],
        out_specs=pl.BlockSpec((1, ts, head_dim),
                               lambda bi, si, hi: (bi, si, hi)),
        compiler_params=pltpu.CompilerParams(
            dimension_semantics=("parallel", "parallel", "arbitrary"),
            vmem_limit_bytes=_VMEM_LIMIT),
    )(qkv3d, cos_f, sin_signed_f)


# ----------------------------------------------------------------------------
# Kernel 3: flash attention (GQA aware, causal, RoPE(Q) fused + hoisted).
# Grid = (batch, kv_head, q_tile, kv_tile); kv innermost with resident f32
# running stats.  Q/V come straight from the fused qkv buffer via lane blocks;
# output is written lane-dense in (B, S, H) layout (no head transposes).
# ----------------------------------------------------------------------------
def _flash_attn_kernel(q_ref, k_ref, v_ref, cosq_ref, sinq_ref, o_ref,
                       qrot_ref, m_ref, l_ref, acc_ref):
    tq = q_ref.shape[1]
    tk = k_ref.shape[1]
    dh = k_ref.shape[2]
    group = q_ref.shape[2] // dh
    half = dh // 2

    qi = pl.program_id(2)
    ki = pl.program_id(3)
    q_start = qi * tq
    k_start = ki * tk

    @pl.when(ki == 0)
    def _init():
        m_ref[...] = jnp.full_like(m_ref, -jnp.inf)
        l_ref[...] = jnp.zeros_like(l_ref)
        acc_ref[...] = jnp.zeros_like(acc_ref)
        # RoPE(Q) once per q tile (qk_scale is folded into cos_q / sin_q), cached
        # in bf16 VMEM and reused by every kv step.
        cq = cosq_ref[...].astype(jnp.float32)
        sq = sinq_ref[...].astype(jnp.float32)
        q_all = q_ref[0].astype(jnp.float32)            # (tq, group*dh)
        rot = []
        for g in range(group):                          # static, small unroll
            qg = q_all[:, g * dh:(g + 1) * dh]
            rot.append(qg * cq + pltpu.roll(qg, shift=half, axis=1) * sq)
        qrot_ref[...] = jnp.concatenate(rot, axis=0).astype(qrot_ref.dtype)

    def _update(masked):
        kb = k_ref[0]                                   # (tk, dh), already RoPE'd
        s = lax.dot_general(qrot_ref[...], kb, (((1,), (1,)), ((), ())),
                            preferred_element_type=jnp.float32)   # (G*tq, tk)
        if masked:
            # Mask only on the diagonal tile; broadcast over the head axis
            # instead of materializing a (G*tq, tk) tiled bias.
            row = lax.broadcasted_iota(jnp.int32, (tq, tk), 0) + q_start
            col = lax.broadcasted_iota(jnp.int32, (tq, tk), 1) + k_start
            bias = jnp.where(col <= row, jnp.float32(0.0), jnp.float32(-jnp.inf))
            s = (s.reshape(group, tq, tk) + bias).reshape(group * tq, tk)
        m_prev = m_ref[...]
        m_new = jnp.maximum(m_prev, jnp.max(s, axis=-1, keepdims=True))
        alpha = jnp.exp(m_prev - m_new)
        p = jnp.exp(s - m_new)
        l_ref[...] = alpha * l_ref[...] + jnp.sum(p, axis=-1, keepdims=True)
        acc_ref[...] = alpha * acc_ref[...] + jnp.dot(
            p.astype(v_ref.dtype), v_ref[0], preferred_element_type=jnp.float32)
        m_ref[...] = m_new

    # Tile classification: fully-past (no mask), diagonal (masked), or
    # fully-future (nothing at all; its K/V DMA is also skipped via index clamp).
    on_diag = jnp.logical_and(k_start < q_start + tq, k_start + tk - 1 > q_start)
    fully_past = k_start + tk - 1 <= q_start

    @pl.when(on_diag)
    def _diag():
        _update(True)

    @pl.when(fully_past)
    def _past():
        _update(False)

    @pl.when(ki == pl.num_programs(3) - 1)
    def _finalize():
        out = acc_ref[...] * pl.reciprocal(l_ref[...], approx=False)
        # NaN/Inf -> 1e-8 scrub (mirrors the torch module's post-attention scrub)
        out = jnp.where(jnp.isnan(out), jnp.float32(1e-8), out)
        out = jnp.where(jnp.isinf(out), jnp.float32(1e-8), out)
        # Lane-dense (tq, group*dh) store straight into the (B, S, H) output.
        o_ref[0] = jnp.concatenate(
            [out[g * tq:(g + 1) * tq, :] for g in range(group)],
            axis=1).astype(o_ref.dtype)


def flash_attention(qkv3d, k_rot, cos_q, sin_q, *, num_q_heads, num_kv_heads,
                    head_dim, block_q=128, block_k=256):
    b, s, _ = qkv3d.shape
    group = num_q_heads // num_kv_heads
    h = num_q_heads * head_dim
    gdh = group * head_dim
    tq = _fit_tile(s, block_q, 16)
    tk = _fit_tile(s, block_k, 16)
    grid = (b, num_kv_heads, s // tq, s // tk)

    def last_kv_block(qi):
        # Last kv tile that overlaps the causal window of q tile `qi`.
        return ((qi + 1) * tq - 1) // tk

    def q_idx(bi, hi, qi, ki):
        # Q columns of kv-head-group hi live at lane-block hi (width group*dh);
        # independent of ki so the block is fetched once per q tile.
        return (bi, qi, hi)

    def k_idx(bi, hi, qi, ki):
        # Clamp so causally-dead kv tiles repeat the previous block index and
        # their DMA is skipped entirely (pl.when alone only skips compute).
        return (bi, jnp.minimum(ki, last_kv_block(qi)), hi)

    def v_idx(bi, hi, qi, ki):
        return (bi, jnp.minimum(ki, last_kv_block(qi)),
                num_q_heads + num_kv_heads + hi)

    def tbl_idx(bi, hi, qi, ki):
        return (qi, 0)

    return pl.pallas_call(
        _flash_attn_kernel,
        out_shape=jax.ShapeDtypeStruct((b, s, h), DTYPE),
        grid=grid,
        in_specs=[
            pl.BlockSpec((1, tq, gdh), q_idx),          # Q lanes of fused qkv
            pl.BlockSpec((1, tk, head_dim), k_idx),     # pre-RoPE'd K
            pl.BlockSpec((1, tk, head_dim), v_idx),     # V lanes of fused qkv
            pl.BlockSpec((tq, head_dim), tbl_idx),      # cos * qk_scale
            pl.BlockSpec((tq, head_dim), tbl_idx),      # signed sin * qk_scale
        ],
        out_specs=pl.BlockSpec((1, tq, gdh),
                               lambda bi, hi, qi, ki: (bi, qi, hi)),
        scratch_shapes=[
            pltpu.VMEM((group * tq, head_dim), DTYPE),        # cached RoPE'd Q
            pltpu.VMEM((group * tq, 1), jnp.float32),         # running max m
            pltpu.VMEM((group * tq, 1), jnp.float32),         # running denom l
            pltpu.VMEM((group * tq, head_dim), jnp.float32),  # output accumulator
        ],
        compiler_params=pltpu.CompilerParams(
            dimension_semantics=("parallel", "parallel", "parallel", "arbitrary"),
            vmem_limit_bytes=_VMEM_LIMIT),
    )(qkv3d, k_rot, qkv3d, cos_q, sin_q)


# ----------------------------------------------------------------------------
# Parameter prep (done once at load time, not per forward call).
# ----------------------------------------------------------------------------
def prepare_qwen2_attention_params(q_w, q_b, kv_w, kv_b, o_w):
    """Fuse/transpose the projection weights once.  F.linear(x, W) == x @ W.T."""
    w_qkv_t = jnp.concatenate([q_w, kv_w], axis=0).T       # (H, H + 2*Kd)
    b_qkv = jnp.concatenate([q_b, kv_b], axis=0).reshape(1, -1)
    o_w_t = o_w.T                                           # (H, H)
    return w_qkv_t, b_qkv, o_w_t


# ----------------------------------------------------------------------------
# Forward pass (prefill / context_forward semantics).
# ----------------------------------------------------------------------------
def qwen2_attention_forward(x, w_qkv_t, b_qkv, o_w_t, cos, sin,
                            num_heads, num_kv_heads, qk_scale=None,
                            attn_block_q=128, attn_block_k=256):
    b, s, h = x.shape
    dh = h // num_heads
    kd = num_kv_heads * dh
    n = b * s
    assert num_heads % num_kv_heads == 0
    # Lane-block indexing into the fused qkv buffer needs 128-lane head slabs.
    assert dh % 128 == 0, "head_dim must be a multiple of 128"
    if qk_scale is None:
        qk_scale = 1.0 / float(np.sqrt(dh))

    # 1) fused QKV projection (single wide lane-dense output slab)
    qkv = tiled_matmul(x.reshape(n, h), w_qkv_t, b_qkv)        # (N, H+2Kd)
    qkv = qkv.reshape(b, s, h + 2 * kd)                        # free reshape

    # RoPE tables: rotate_half(t)*sin == roll(t, Dh/2)*sin_signed with the first
    # half of sin negated.  qk_scale is folded into the Q tables only.
    half = dh // 2
    cos_f = cos.astype(jnp.float32)
    sin_signed = jnp.concatenate([-sin[:, :half], sin[:, half:]],
                                 axis=-1).astype(jnp.float32)
    scale = jnp.float32(qk_scale)
    cos_q = cos_f * scale
    sin_q = sin_signed * scale

    # 2) RoPE(K) pre-pass (reads K lanes from qkv, writes rotated K once)
    k_rot = rope_rotate_k(qkv, cos_f, sin_signed,
                          num_q_heads=num_heads, num_kv_heads=num_kv_heads,
                          head_dim=dh)

    # 3) flash attention; output lands directly in (B, S, H) layout
    attn = flash_attention(qkv, k_rot, cos_q, sin_q,
                           num_q_heads=num_heads, num_kv_heads=num_kv_heads,
                           head_dim=dh, block_q=attn_block_q,
                           block_k=attn_block_k)

    # 4) output projection (no bias)
    out2d = tiled_matmul(attn.reshape(n, h), o_w_t)
    return out2d.reshape(b, s, h)


# ----------------------------------------------------------------------------
# Plain-JAX reference (for correctness check).
# ----------------------------------------------------------------------------
def reference_forward(x, q_w, q_b, kv_w, kv_b, o_w, cos, sin,
                      num_heads, num_kv_heads):
    b, s, h = x.shape
    dh = h // num_heads
    kd = num_kv_heads * dh
    scale = 1.0 / np.sqrt(dh)
    xf = x.astype(jnp.float32).reshape(b * s, h)
    xq = xf @ q_w.astype(jnp.float32).T + q_b.astype(jnp.float32)
    xkv = xf @ kv_w.astype(jnp.float32).T + kv_b.astype(jnp.float32)
    xk, xv = xkv[:, :kd], xkv[:, kd:]
    q = xq.reshape(b, s, num_heads, dh)
    k = xk.reshape(b, s, num_kv_heads, dh)
    v = xv.reshape(b, s, num_kv_heads, dh)
    cosf = cos.astype(jnp.float32)[None, :, None, :]
    sinf = sin.astype(jnp.float32)[None, :, None, :]

    def rope(t):
        d = t.shape[-1]
        t1, t2 = t[..., :d // 2], t[..., d // 2:]
        return t * cosf + jnp.concatenate([-t2, t1], -1) * sinf

    q, k = rope(q), rope(k)
    group = num_heads // num_kv_heads
    k = jnp.repeat(k, group, axis=2)
    v = jnp.repeat(v, group, axis=2)
    sc = jnp.einsum('bqhd,bkhd->bhqk', q, k) * scale
    mask = np.tril(np.ones((s, s), bool))
    sc = jnp.where(mask, sc, -jnp.inf)
    p = jax.nn.softmax(sc, axis=-1)
    o = jnp.einsum('bhqk,bkhd->bqhd', p, v).reshape(b, s, h)
    return o @ o_w.astype(jnp.float32).T


if __name__ == "__main__":
    # Small but layout-realistic shapes: head_dim = 128 (Qwen2-style), GQA group 2.
    # S=32 with 16-wide attention tiles exercises the diagonal, fully-past and
    # skipped kv-tile paths plus the causal DMA clamp.
    B, S = 2, 32
    hidden, num_heads, num_kv_heads = 512, 4, 2
    Dh = hidden // num_heads
    Kd = num_kv_heads * Dh

    key = jax.random.PRNGKey(0)
    k1, k2, k3, k4, k5, k6 = jax.random.split(key, 6)
    # torch.rand-style uniform [0,1) parameter init (deterministic)
    q_w = jax.random.uniform(k1, (hidden, hidden), jnp.float32).astype(DTYPE)
    q_b = jax.random.uniform(k2, (hidden,), jnp.float32).astype(DTYPE)
    kv_w = jax.random.uniform(k3, (2 * Kd, hidden), jnp.float32).astype(DTYPE)
    kv_b = jax.random.uniform(k4, (2 * Kd,), jnp.float32).astype(DTYPE)
    o_w = jax.random.uniform(k5, (hidden, hidden), jnp.float32).astype(DTYPE)
    x = (jax.random.normal(k6, (B, S, hidden), jnp.float32) * 0.1).astype(DTYPE)

    # RoPE tables (rotate-half convention), positions 0..S-1
    pos = np.arange(S, dtype=np.float32)
    inv_freq = 1.0 / (10000.0 ** (np.arange(0, Dh, 2, dtype=np.float32) / Dh))
    freqs = np.outer(pos, inv_freq)                             # (S, Dh/2)
    cos = jnp.asarray(np.concatenate([np.cos(freqs), np.cos(freqs)], -1), DTYPE)
    sin = jnp.asarray(np.concatenate([np.sin(freqs), np.sin(freqs)], -1), DTYPE)

    # Weight fusion/transpose hoisted out of the per-call forward path.
    w_qkv_t, b_qkv, o_w_t = prepare_qwen2_attention_params(q_w, q_b, kv_w, kv_b, o_w)

    out = qwen2_attention_forward(x, w_qkv_t, b_qkv, o_w_t, cos, sin,
                                  num_heads, num_kv_heads,
                                  attn_block_q=16, attn_block_k=16)
    out = jax.block_until_ready(out)

    ref = reference_forward(x, q_w, q_b, kv_w, kv_b, o_w, cos, sin,
                            num_heads, num_kv_heads)
    np.testing.assert_allclose(np.asarray(out, np.float32),
                               np.asarray(ref, np.float32),
                               rtol=5e-2, atol=5e-1)
    print("KERNEL_OK")
</pallas_src>

<mosaic_0001>
module attributes {stable_mosaic.version = 11 : i64} {
  func.func @_matmul_bias_kernel(%arg0: i32, %arg1: i32, %arg2: i32, %arg3: memref<64x512xbf16, #tpu.memory_space<vmem>>, %arg4: memref<512x512xbf16, #tpu.memory_space<vmem>>, %arg5: memref<1x512xbf16, #tpu.memory_space<vmem>>, %arg6: memref<64x512xbf16, #tpu.memory_space<vmem>>, %arg7: memref<64x512xf32, #tpu.memory_space<vmem>>) attributes {dimension_semantics = [#tpu.dimension_semantics<parallel>, #tpu.dimension_semantics<parallel>, #tpu.dimension_semantics<arbitrary>], iteration_bounds = array<i64: 1, 2, 1>, scalar_prefetch = 0 : i64, scratch_operands = 1 : i64, tpu.core_type = #tpu.core_type<tc>, window_params = [{transform_indices = @transform_0, window_bounds = array<i64: 64, 512>}, {transform_indices = @transform_1, window_bounds = array<i64: 512, 512>}, {transform_indices = @transform_2, window_bounds = array<i64: 1, 512>}, {transform_indices = @transform_3, window_bounds = array<i64: 64, 512>}]} {
    %c0_i32 = arith.constant 0 : i32
    %0 = arith.cmpi eq, %arg2, %c0_i32 : i32
    %1 = arith.extui %0 : i1 to i32
    %c0_i32_0 = arith.constant 0 : i32
    %2 = arith.cmpi ne, %1, %c0_i32_0 : i32
    scf.if %2 {
      %cst_10 = arith.constant 0.000000e+00 : f32
      %12 = vector.broadcast %cst_10 : f32 to vector<64x512xf32>
      %c0_11 = arith.constant 0 : index
      %c0_12 = arith.constant 0 : index
      %13 = vector.load %arg7[%c0_11, %c0_12] : memref<64x512xf32, #tpu.memory_space<vmem>>, vector<64x512xf32>
      tpu.vector_store %arg7[%c0_11, %c0_12], %12 {strides = array<i32>} : memref<64x512xf32, #tpu.memory_space<vmem>>, vector<64x512xf32>,
    } else {
    }
    %c0 = arith.constant 0 : index
    %c0_1 = arith.constant 0 : index
    %3 = vector.load %arg7[%c0, %c0_1] : memref<64x512xf32, #tpu.memory_space<vmem>>, vector<64x512xf32>
    %c0_2 = arith.constant 0 : index
    %c0_3 = arith.constant 0 : index
    %4 = vector.load %arg3[%c0_2, %c0_3] : memref<64x512xbf16, #tpu.memory_space<vmem>>, vector<64x512xbf16>
    %c0_4 = arith.constant 0 : index
    %c0_5 = arith.constant 0 : index
    %5 = vector.load %arg4[%c0_4, %c0_5] : memref<512x512xbf16, #tpu.memory_space<vmem>>, vector<512x512xbf16>
    %cst = arith.constant dense<0.000000e+00> : vector<64x512xf32>
    %6 = tpu.matmul %4, %5, %cst {dimension_numbers = #tpu.dot_dimension_numbers<[1], [0], [0], [1], [0, 0, 1, 1], [], []>} : vector<64x512xbf16>, vector<512x512xbf16>, vector<64x512xf32> -> vector<64x512xf32>
    %7 = arith.addf %3, %6 : vector<64x512xf32>
    %c0_6 = arith.constant 0 : index
    %c0_7 = arith.constant 0 : index
    %8 = vector.load %arg7[%c0_6, %c0_7] : memref<64x512xf32, #tpu.memory_space<vmem>>, vector<64x512xf32>
    tpu.vector_store %arg7[%c0_6, %c0_7], %7 {strides = array<i32>} : memref<64x512xf32, #tpu.memory_space<vmem>>, vector<64x512xf32>,
    %c0_i32_8 = arith.constant 0 : i32
    %9 = arith.cmpi eq, %arg2, %c0_i32_8 : i32
    %10 = arith.extui %9 : i1 to i32
    %c0_i32_9 = arith.constant 0 : i32
    %11 = arith.cmpi ne, %10, %c0_i32_9 : i32
    scf.if %11 {
      %c0_10 = arith.constant 0 : index
      %c0_11 = arith.constant 0 : index
      %12 = vector.load %arg7[%c0_10, %c0_11] : memref<64x512xf32, #tpu.memory_space<vmem>>, vector<64x512xf32>
      %c0_12 = arith.constant 0 : index
      %c0_13 = arith.constant 0 : index
      %13 = vector.load %arg5[%c0_12, %c0_13] : memref<1x512xbf16, #tpu.memory_space<vmem>>, vector<1x512xbf16>
      %14 = arith.extf %13 : vector<1x512xbf16> to vector<1x512xf32>
      %15 = vector.broadcast %14 : vector<1x512xf32> to vector<64x512xf32>
      %16 = arith.addf %12, %15 : vector<64x512xf32>
      %17 = arith.truncf %16 : vector<64x512xf32> to vector<64x512xbf16>
      %c0_14 = arith.constant 0 : index
      %c0_15 = arith.constant 0 : index
      %18 = vector.load %arg6[%c0_14, %c0_15] : memref<64x512xbf16, #tpu.memory_space<vmem>>, vector<64x512xbf16>
      tpu.vector_store %arg6[%c0_14, %c0_15], %17 {strides = array<i32>} : memref<64x512xbf16, #tpu.memory_space<vmem>>, vector<64x512xbf16>,
    } else {
    }
    return
  }
  func.func @transform_0(%arg0: i32, %arg1: i32, %arg2: i32) -> (i32, i32) {
    %c0_i32 = arith.constant 0 : i32
    return %arg0, %arg2 : i32, i32
  }
  func.func @transform_1(%arg0: i32, %arg1: i32, %arg2: i32) -> (i32, i32) {
    %c0_i32 = arith.constant 0 : i32
    return %arg2, %arg1 : i32, i32
  }
  func.func @transform_2(%arg0: i32, %arg1: i32, %arg2: i32) -> (i32, i32) {
    %c0_i32 = arith.constant 0 : i32
    %c0_i32_0 = arith.constant 0 : i32
    return %c0_i32, %arg1 : i32, i32
  }
  func.func @transform_3(%arg0: i32, %arg1: i32, %arg2: i32) -> (i32, i32) {
    %c0_i32 = arith.constant 0 : i32
    return %arg0, %arg1 : i32, i32
  }
}

</mosaic_0001>

<bundles_post_ra>
// kernel: tpu_custom_call.1
= control target key start
LH: loop header
LB: loop body
LE: loop exit
PB: predicated region body
PF: predicated region fallthrough
CT: control target
= control target key end

     0   :  { %s3682_s0 = inlined_call_operand.hbm [shape: bf16[64,512], index: 0, kind: input, shape index: {}]   ;;  %s3683_s1 = inlined_call_operand.hbm [shape: bf16[512,1024], index: 1, kind: input, shape index: {}]   ;;  %s3684_s2 = inlined_call_operand.hbm [shape: bf16[1,1024], index: 2, kind: input, shape index: {}]   ;;  %s3685_s3 = inlined_call_operand.hbm [shape: bf16[64,1024], index: 3, kind: output, shape index: {}]  }
   0x1   :  { %3688 = sst [smem:[#allocation13_spill]] %s3682_s0 }
   0x2   :  { %3689 = sst [smem:[#allocation14_spill]] %s3683_s1 }
   0x3   :  { %8 = vsyncpa [#allocation4], 0 }
   0x4   :  { %9 = vsyncpa [#allocation7], 0 }
   0x5   :  { %11 = vsyncpa [#allocation7 + $0x1], 0 }
   0x6   :  { %12 = vsyncpa [#allocation5], 0 }
   0x7   :  { %14 = vsyncpa [#allocation5 + $0x1], 0  ;;  %s3041_s12 = smov 0   ;;  %s3043_s13 = smov 0  }
   0x8   :  { %s3045_s14 = smov 0   ;;  %s3047_s15 = smov 0  }
   0x9   :  { %s3049_s16 = smov 0   ;;  %s3051_s17 = smov 0  }
   0xa LB: > { %s35_s18 = sadd.s32 1, %s3008_s16  ;;  %s76_s19 = sadd.s32 1, %s3000_s14  ;;  %s3012_s17 = sphi %s3051_s17, %s20_s17   ;;  %s3008_s16 = sphi %s3049_s16, %s3704_s16   ;;  %s3004_s15 = sphi %s3047_s15, %s3703_s15   ;;  %s3000_s14 = sphi %s3045_s14, %s3702_s14   ;;  %s2996_s13 = sphi %s3043_s13, %s3701_s13   ;;  %s2992_s12 = sphi %s3041_s12, %s3700_s12  }
   0xb   : > { %p37_p0 = scmp.ge.s32.totalorder %s35_s18, 2  ;;  %p83_p1 = scmp.ne.s32.totalorder %s3000_s14, %s2996_s13 }
   0xc   : > { %p84_p2 = scmp.eq.s32.totalorder %s3012_s17, 0  ;;  %p2014_p4 = scmp.ge.s32.totalorder %s3012_s17, 2 }
   0xd   : > { %s3706_s18 = smov (%p37_p0, %s35_s18), 0  ;;  %p2778_p6 = scmp.lt.s32.totalorder %s3012_s17, 2 }
   0xe   : > { %p3081_p3 = por %p84_p2, %p83_p1  ;;  %s72_s21 = ssub.s32 %s3008_s16, %s3706_s18 }
   0xf   : > { %p74_p5 = scmp.eq.s32.totalorder %s72_s21, 0  ;;  %s187_s22 = sand.u32 1, %s3012_s17  }
  0x10   : > { %s189_s23 = sand.u32 1, %s3000_s14   ;;  %s2606_s26 = sshll.u32 %s3008_s16, 4 }
  0x11   : > { %s3092_s24 = scalar_select %p74_p5, %s3000_s14, %s76_s19  }
  0x12   : > { %s2015_s25 = sshll.u32 %s189_s23, 10  ;;  %s3691_s1 = sld [smem:[#allocation14_spill]] }
  0x13   : > { %s191_s30 = scalar_lea.vmem [#allocation6], %s2015_s25  ;;  %p3102_p7 = pnand %p2778_p6, %p3081_p3 }
  0x14   : > { %s202_s4 = sshll.u32 %s191_s30, 4  ;;  %s3106_s7 = scalar_lea.sflag [#allocation7], %s187_s22  ;;  %s203_s4 = int_to_ptr.vmem [resolvable:$true] %s202_s4 }
  0x15   : > { %s3014_s8 = smov 512   ;;  %s3686_s9 = smov 256  }
  0x16   : > { %s3687_s10 = smov 16   ;;  %s3114_s11 = sadd.s32 4294967295, %s3012_s17  }
  0x17   : > { %s2011_s19 = sadd.s32 4294967294, %s3012_s17   ;;  %p89_p8 = scmp.ne.s32.totalorder %s2996_s13, %s2992_s12 }
  0x18   : > { %s199_s29 = scalar_lea.hbm %s3691_s1, %s2606_s26  ;;  %p90_p9 = scmp.eq.s32.totalorder %s3114_s11, 0 }
  0x19   : > { %s200_s5 = sshll.u32 %s199_s29, 4  ;;  %p141_p10 = scmp.eq.s32.totalorder %s3114_s11, 1  ;;  %s201_s5 = int_to_ptr.hbm [resolvable:$true] %s200_s5 }
  0x1a   : > { %2769 = dma.hbm_to_vmem [thread:$0]  (!%p3102_p7), %s201_s5, 16384, %s203_s4, %s3106_s7, %s3014_s8, %s3686_s9, %s3687_s10  }
  0x1b   : > { %p147_p11 = scmp.eq.s32.totalorder %s2011_s19, 1  ;;  %p3123_p12 = por %p90_p9, %p89_p8 }
  0x1c   : > { %p2012_p13 = scmp.ge.s32.totalorder %s3012_s17, 1  ;;  %p3131_p0 = por %p141_p10, %p83_p1 }
  0x1d   : > { %p3135_p2 = por %p147_p11, %p89_p8  ;;  %p154_p3 = scmp.lt.s32.totalorder %s3012_s17, 3 }
  0x1e   : > { %s3696_s0 = sld [smem:[#allocation13_spill]]  ;;  %s3017_s29 = smov [#allocation3]  }
  0x1f   : > { %p3143_p5 = pnand %p2012_p13, %p154_p3  ;;  %s173_s30 = sshll.u32 %s3017_s29, 4  ;;  %s174_s30 = int_to_ptr.vmem [resolvable:$true] %s173_s30 }
  0x20   : > { %s2018_s4 = sshll.u32 %s189_s23, 2  ;;  %s2019_s5 = sshll.u32 %s3008_s16, 2 }
  0x21   : > { %p2762_p1 = pneg %p3143_p5  ;;  %s220_s25 = scalar_lea.hbm %s3684_s2, %s2019_s5 }
  0x22   : > { %s222_s26 = sshll.u32 %s220_s25, 4  ;;  %s216_s9 = scalar_lea.vmem [#allocation8], %s2018_s4  ;;  %s223_s26 = int_to_ptr.hbm [resolvable:$true] %s222_s26 }
  0x23   : > { %p2763_p6 = pnand %p2762_p1, %p90_p9  ;;  %s224_s10 = sshll.u32 %s216_s9, 4  ;;  %s225_s10 = int_to_ptr.vmem [resolvable:$true] %s224_s10 }
  0x24   : > { %s171_s27 = sshll.u32 %s3696_s0, 4  ;;  %s3698_s0 = smov 16   ;;  %s172_s27 = int_to_ptr.hbm [resolvable:$true] %s171_s27 }
  0x25   : > { %s3699_s1 = smov 256   ;;  %233 = sbr.rel (%p3143_p5) target bundleno = 476 (0x1dc), region = 32 }
  0x26   : > { %2765 = dma.hbm_to_vmem [thread:$0]  (!%p2763_p6), %s172_s27, 2048, %s174_s30, [#allocation4], %s3699_s1, %s3699_s1, %s3698_s0  }
  0x27   : > { %2772 = dma.hbm_to_vmem [thread:$0]  (!%p3102_p7), %s223_s26, 64, %s225_s10, %s3106_s7  }
  0x2a   : > { %2979 = dma.done.wait (%p90_p9), [#allocation4], 2048  }
  0x2b   : > { %2981 = vsyncadd (%p90_p9), [#allocation4], 4294965248  ;;  %s240_s23 = sand.u32 1, %s3114_s11   ;;  %s3171_s9 = sand.u32 1, %s2996_s13  }
  0x2c   : > { %s2022_s0 = sshll.u32 %s3171_s9, 10  ;;  %s241_s1 = scalar_lea.sflag [#allocation7], %s240_s23 }
  0x2d   : > { %s3174_s6 = scalar_lea.vmem [#allocation6], %s2022_s0 }
  0x2e   : > { %2983 = dma.done.wait (%p3123_p12), %s241_s1, 16448  }
  0x2f   : > { %2985 = vsyncadd (%p3123_p12), %s241_s1, 4294950848  ;;  %v2203_v0 = vld [vmem:[%s3174_s6 + $0xe0] sm:$0xf]  ;;  %v2653_v1 = vld [vmem:[%s3174_s6 + $0xec] sm:$0xf0]  ;;  %s2023_s7 = sshll.u32 %s3171_s9, 2 }
  0x30   : > { %v2331_v2 = vld [vmem:[%s3174_s6 + $0x1e0] sm:$0xf]  ;;  %v2204_v3 = vor.u32 %v2653_v1, %v2203_v0  ;;  %v2685_v4 = vld [vmem:[%s3174_s6 + $0x1ec] sm:$0xf0]  ;;  %s254_s10 = scalar_lea.vmem [#allocation8], %s2023_s7  ;;  %s2024_s11 = sshll.u32 %s3171_s9, 7 }
  0x31   : > { %v2459_v5 = vld [vmem:[%s3174_s6 + $0x2e0] sm:$0xf]  ;;  %v2717_v6 = vld [vmem:[%s3174_s6 + $0x2ec] sm:$0xf0]  ;;  %v2332_v7 = vor.u32 %v2685_v4, %v2331_v2  ;;  %s3549_s20 = scalar_lea.vmem [#allocation9], %s2024_s11  ;;  %s2751_s27 = sshll.u32 %s3004_s15, 4 }
  0x32   : > { %v2460_v8 = vor.u32 %v2717_v6, %v2459_v5  ;;  %v2587_v9 = vld [vmem:[%s3174_s6 + $0x3e0] sm:$0xf]  ;;  %v2749_v10 = vld [vmem:[%s3174_s6 + $0x3ec] sm:$0xf0]  ;;  %1222 = vmatpush.bf16.msra.mxu0 %v2204_v3  ;;  %s1879_s30 = scalar_lea.hbm %s3685_s3, %s2751_s27  ;;  %s1880_s4 = sshll.u32 %s3549_s20, 4  ;;  %s1881_s4 = int_to_ptr.vmem [resolvable:$true] %s1880_s4 }
  0x33   : > { %v2187_v11 = vld [vmem:[%s3174_s6 + $0xc0] sm:$0xf]  ;;  %v2588_v12 = vor.u32 %v2749_v10, %v2587_v9  ;;  %v2649_v13 = vld [vmem:[%s3174_s6 + $0xcc] sm:$0xf0]  ;;  %1251 = vmatpush.bf16.msra.mxu1 %v2332_v7  ;;  %s1882_s5 = sshll.u32 %s1879_s30, 4  ;;  %s1865_s15 = scalar_lea.sflag [#allocation5], %s3171_s9  ;;  %s1883_s5 = int_to_ptr.hbm [resolvable:$true] %s1882_s5 }
  0x34   : > { %v2315_v14 = vld [vmem:[%s3174_s6 + $0x1c0] sm:$0xf]  ;;  %v2681_v15 = vld [vmem:[%s3174_s6 + $0x1cc] sm:$0xf0]  ;;  %1280 = vmatpush.bf16.msra.mxu2 %v2460_v8  ;;  %v2188_v16 = vor.u32 %v2649_v13, %v2187_v11  ;;  %s2940_s8 = sshra.s32 %s1883_s5, 4  ;;  %s2946_s23 = scalar_lea.hbm %s3685_s3, 256  ;;  %s2941_s8 = int_to_ptr.hbm [resolvable:$true] %s2940_s8 }
  0x35   : > { %v2316_v17 = vor.u32 %v2681_v15, %v2315_v14  ;;  %v2443_v18 = vld [vmem:[%s3174_s6 + $0x2c0] sm:$0xf]  ;;  %v2713_v19 = vld [vmem:[%s3174_s6 + $0x2cc] sm:$0xf0]  ;;  %1309 = vmatpush.bf16.msra.mxu3 %v2588_v12  ;;  %s2942_s19 = scalar_lea.hbm %s2941_s8, 128  ;;  %p2947_p10 = scmp.lt.s32.totalorder %s2941_s8, %s3685_s3 }
  0x36   : > { %v2571_v20 = vld [vmem:[%s3174_s6 + $0x3c0] sm:$0xf]  ;;  %v2444_v21 = vor.u32 %v2713_v19, %v2443_v18  ;;  %v2745_v22 = vld [vmem:[%s3174_s6 + $0x3cc] sm:$0xf0]  ;;  %1223 = vmatpush.bf16.msra.mxu0 %v2188_v16  ;;  %p2943_p7 = scmp.ne.s32.totalorder %s2941_s8, %s2942_s19  ;;  %p2948_p11 = scmp.lt.s32.totalorder %s2946_s23, %s2942_s19 }
  0x37   : > { %v2171_v23 = vld [vmem:[%s3174_s6 + $0xa0] sm:$0xf]  ;;  %v2645_v24 = vld [vmem:[%s3174_s6 + $0xac] sm:$0xf0]  ;;  %v2572_v25 = vor.u32 %v2745_v22, %v2571_v20  ;;  %1252 = vmatpush.bf16.msra.mxu1 %v2316_v17 }
  0x38   : > { %v2299_v26 = vld [vmem:[%s3174_s6 + $0x1a0] sm:$0xf]  ;;  %v2677_v27 = vld [vmem:[%s3174_s6 + $0x1ac] sm:$0xf0]  ;;  %v2172_v29 = vor.u32 %v2645_v24, %v2171_v23  ;;  %1281 = vmatpush.bf16.msra.mxu2 %v2444_v21  ;;  %p2944_p8 = pnand %p2943_p7, %p3131_p0  ;;  %p2949_p12 = por %p2948_p11, %p2947_p10 }
  0x39   : > { %v2427_v28 = vld [vmem:[%s3174_s6 + $0x2a0] sm:$0xf]  ;;  %v2709_v30 = vld [vmem:[%s3174_s6 + $0x2ac] sm:$0xf0]  ;;  %v2300_v33 = vor.u32 %v2677_v27, %v2299_v26  ;;  %1310 = vmatpush.bf16.msra.mxu3 %v2572_v25 }
  0x3a   : > { %v2555_v31 = vld [vmem:[%s3174_s6 + $0x3a0] sm:$0xf]  ;;  %v2741_v32 = vld [vmem:[%s3174_s6 + $0x3ac] sm:$0xf0]  ;;  %v2428_v34 = vor.u32 %v2709_v30, %v2427_v28  ;;  %1224 = vmatpush.bf16.msra.mxu0 %v2172_v29  ;;  %v2607_v30 = vld [vmem:[#allocation3 + $0x4] sm:$0xf]  ;;  %p2945_p9 = pneg %p2944_p8 }
  0x3b   : > { %v2155_v35 = vld [vmem:[%s3174_s6 + $0x80] sm:$0xf]  ;;  %v2641_v36 = vld [vmem:[%s3174_s6 + $0x8c] sm:$0xf0]  ;;  %v2556_v38 = vor.u32 %v2741_v32, %v2555_v31  ;;  %1253 = vmatpush.bf16.msra.mxu1 %v2300_v33  ;;  %v2029_v31 = vld [vmem:[#allocation3 + $0x10] sm:$0xf0] }
  0x3c   : > { %v2283_v37 = vld [vmem:[%s3174_s6 + $0x180] sm:$0xf]  ;;  %v2673_v39 = vld [vmem:[%s3174_s6 + $0x18c] sm:$0xf0]  ;;  %v2156_v44 = vor.u32 %v2641_v36, %v2155_v35  ;;  %1282 = vmatpush.bf16.msra.mxu2 %v2428_v34  ;;  %v2715_v32 = vld [vmem:[%s3174_s6 + $0x2e4] sm:$0xf]  ;;  %p2950_p13 = pnand %p2949_p12, %p2945_p9 }
  0x3d   : > { %v2411_v40 = vld [vmem:[%s3174_s6 + $0x280] sm:$0xf]  ;;  %v2705_v41 = vld [vmem:[%s3174_s6 + $0x28c] sm:$0xf0]  ;;  %v2284_v45 = vor.u32 %v2673_v39, %v2283_v37  ;;  %1311 = vmatpush.bf16.msra.mxu3 %v2556_v38  ;;  %v2461_v33 = vld [vmem:[%s3174_s6 + $0x2f0] sm:$0xf0] }
  0x3e   : > { %v2539_v42 = vld [vmem:[%s3174_s6 + $0x380] sm:$0xf]  ;;  %v2737_v43 = vld [vmem:[%s3174_s6 + $0x38c] sm:$0xf0]  ;;  %v2412_v46 = vor.u32 %v2705_v41, %v2411_v40  ;;  %1225 = vmatpush.bf16.msra.mxu0 %v2156_v44  ;;  %v2035_v35 = vld [vmem:[#allocation3 + $0x8] sm:$0xf]  ;;  %v2464_v44 = vor.u32 %v2715_v32, %v2461_v33 }
  0x3f   : > { %v2139_v47 = vld [vmem:[%s3174_s6 + $0x60] sm:$0xf]  ;;  %v2637_v48 = vld [vmem:[%s3174_s6 + $0x6c] sm:$0xf0]  ;;  %v2540_v50 = vor.u32 %v2737_v43, %v2539_v42  ;;  %1254 = vmatpush.bf16.msra.mxu1 %v2284_v45  ;;  %v2747_v36 = vld [vmem:[%s3174_s6 + $0x3e4] sm:$0xf] }
  0x40   : > { %v2267_v49 = vld [vmem:[%s3174_s6 + $0x160] sm:$0xf]  ;;  %v2669_v51 = vld [vmem:[%s3174_s6 + $0x16c] sm:$0xf0]  ;;  %v2140_v56 = vor.u32 %v2637_v48, %v2139_v47  ;;  %1283 = vmatpush.bf16.msra.mxu2 %v2412_v46  ;;  %v2589_v37 = vld [vmem:[%s3174_s6 + $0x3f0] sm:$0xf0] }
  0x41   : > { %v2395_v52 = vld [vmem:[%s3174_s6 + $0x260] sm:$0xf]  ;;  %v2701_v53 = vld [vmem:[%s3174_s6 + $0x26c] sm:$0xf0]  ;;  %v2268_v57 = vor.u32 %v2669_v51, %v2267_v49  ;;  %1312 = vmatpush.bf16.msra.mxu3 %v2540_v50  ;;  %v2610_v40 = vld [vmem:[#allocation3 + $0x14] sm:$0xf0]  ;;  %v2592_v49 = vor.u32 %v2747_v36, %v2589_v37 }
  0x42   : > { %v2523_v54 = vld [vmem:[%s3174_s6 + $0x360] sm:$0xf]  ;;  %v2733_v55 = vld [vmem:[%s3174_s6 + $0x36c] sm:$0xf0]  ;;  %v2396_v58 = vor.u32 %v2701_v53, %v2395_v52  ;;  %1226 = vmatpush.bf16.msra.mxu0 %v2140_v56  ;;  %v2608_v41 = vld [vmem:[#allocation3 + $0xc] sm:$0xf]  ;;  %v3256_v53 = vor.u32 %v2607_v30, %v2029_v31 }
  0x43   : > { %v2123_v59 = vld [vmem:[%s3174_s6 + $0x40] sm:$0xf]  ;;  %v2633_v60 = vld [vmem:[%s3174_s6 + $0x4c] sm:$0xf0]  ;;  %v2524_v62 = vor.u32 %v2733_v55, %v2523_v54  ;;  %1255 = vmatpush.bf16.msra.mxu1 %v2268_v57  ;;  %v2037_v42 = vld [vmem:[#allocation3 + $0x18] sm:$0xf0]  ;;  %v3258_v54 = vor.u32 %v2610_v40, %v2035_v35 }
  0x44   : > { %v2251_v61 = vld [vmem:[%s3174_s6 + $0x140] sm:$0xf]  ;;  %v2665_v63 = vld [vmem:[%s3174_s6 + $0x14c] sm:$0xf0]  ;;  %v2124_v4 = vor.u32 %v2633_v60, %v2123_v59  ;;  %1284 = vmatpush.bf16.msra.mxu2 %v2396_v58  ;;  %v2651_v45 = vld [vmem:[%s3174_s6 + $0xe4] sm:$0xf]  ;;  %v3262_v57 = vor.u32 %v2608_v41, %v2037_v42 }
  0x45   : > { %v2379_v0 = vld [vmem:[%s3174_s6 + $0x240] sm:$0xf]  ;;  %v2697_v1 = vld [vmem:[%s3174_s6 + $0x24c] sm:$0xf0]  ;;  %v2252_v5 = vor.u32 %v2665_v63, %v2251_v61  ;;  %1313 = vmatpush.bf16.msra.mxu3 %v2524_v62  ;;  %v2205_v46 = vld [vmem:[%s3174_s6 + $0xf0] sm:$0xf0] }
  0x46   : > { %v2507_v2 = vld [vmem:[%s3174_s6 + $0x340] sm:$0xf]  ;;  %v2729_v3 = vld [vmem:[%s3174_s6 + $0x34c] sm:$0xf0]  ;;  %v2380_v6 = vor.u32 %v2697_v1, %v2379_v0  ;;  %1227 = vmatpush.bf16.msra.mxu0 %v2124_v4  ;;  %v2683_v47 = vld [vmem:[%s3174_s6 + $0x1e4] sm:$0xf]  ;;  %v2208_v58 = vor.u32 %v2651_v45, %v2205_v46 }
  0x47   : > { %v2107_v7 = vld [vmem:[%s3174_s6 + $0x20] sm:$0xf]  ;;  %v2629_v8 = vld [vmem:[%s3174_s6 + $0x2c] sm:$0xf0]  ;;  %v2508_v10 = vor.u32 %v2729_v3, %v2507_v2  ;;  %1256 = vmatpush.bf16.msra.mxu1 %v2252_v5  ;;  %v2333_v50 = vld [vmem:[%s3174_s6 + $0x1f0] sm:$0xf0] }
  0x48   : > { %v2235_v9 = vld [vmem:[%s3174_s6 + $0x120] sm:$0xf]  ;;  %v2661_v11 = vld [vmem:[%s3174_s6 + $0x12c] sm:$0xf0]  ;;  %v2108_v17 = vor.u32 %v2629_v8, %v2107_v7  ;;  %1285 = vmatpush.bf16.msra.mxu2 %v2380_v6  ;;  %v2711_v51 = vld [vmem:[%s3174_s6 + $0x2c4] sm:$0xf]  ;;  %v2336_v59 = vor.u32 %v2683_v47, %v2333_v50 }
  0x49   : > { %v2363_v12 = vld [vmem:[%s3174_s6 + $0x220] sm:$0xf]  ;;  %v2693_v13 = vld [vmem:[%s3174_s6 + $0x22c] sm:$0xf0]  ;;  %v2236_v21 = vor.u32 %v2661_v11, %v2235_v9  ;;  %1314 = vmatpush.bf16.msra.mxu3 %v2508_v10  ;;  %v2445_v52 = vld [vmem:[%s3174_s6 + $0x2d0] sm:$0xf0] }
  0x4a   : > { %v2491_v14 = vld [vmem:[%s3174_s6 + $0x320] sm:$0xf]  ;;  %v2725_v15 = vld [vmem:[%s3174_s6 + $0x32c] sm:$0xf0]  ;;  %v2364_v22 = vor.u32 %v2693_v13, %v2363_v12  ;;  %1228 = vmatpush.bf16.msra.mxu0 %v2108_v17  ;;  %v2743_v55 = vld [vmem:[%s3174_s6 + $0x3c4] sm:$0xf]  ;;  %v2448_v60 = vor.u32 %v2711_v51, %v2445_v52 }
  0x4b   : > { %v2091_v16 = vld [vmem:[%s3174_s6] sm:$0xf]  ;;  %v2625_v18 = vld [vmem:[%s3174_s6 + $0xc] sm:$0xf0]  ;;  %v2492_v26 = vor.u32 %v2725_v15, %v2491_v14  ;;  %1257 = vmatpush.bf16.msra.mxu1 %v2236_v21  ;;  %v2573_v56 = vld [vmem:[%s3174_s6 + $0x3d0] sm:$0xf0] }
  0x4c   : > { %v2219_v19 = vld [vmem:[%s3174_s6 + $0x100] sm:$0xf]  ;;  %v2657_v20 = vld [vmem:[%s3174_s6 + $0x10c] sm:$0xf0]  ;;  %v2092_v34 = vor.u32 %v2625_v18, %v2091_v16  ;;  %1286 = vmatpush.bf16.msra.mxu2 %v2364_v22  ;;  %v2647_v61 = vld [vmem:[%s3174_s6 + $0xc4] sm:$0xf]  ;;  %v2576_v0 = vor.u32 %v2743_v55, %v2573_v56 }
  0x4d   : > { %v2347_v23 = vld [vmem:[%s3174_s6 + $0x200] sm:$0xf]  ;;  %v2689_v24 = vld [vmem:[%s3174_s6 + $0x20c] sm:$0xf0]  ;;  %v2220_v38 = vor.u32 %v2657_v20, %v2219_v19  ;;  %1315 = vmatpush.bf16.msra.mxu3 %v2492_v26  ;;  %v2189_v62 = vld [vmem:[%s3174_s6 + $0xd0] sm:$0xf0] }
  0x4e   : > { %v2475_v25 = vld [vmem:[%s3174_s6 + $0x300] sm:$0xf]  ;;  %v2721_v27 = vld [vmem:[%s3174_s6 + $0x30c] sm:$0xf0]  ;;  %v2348_v39 = vor.u32 %v2689_v24, %v2347_v23  ;;  %1229 = vmatpush.bf16.msra.mxu0 %v2092_v34  ;;  %v2679_v63 = vld [vmem:[%s3174_s6 + $0x1c4] sm:$0xf]  ;;  %v2192_v6 = vor.u32 %v2647_v61, %v2189_v62 }
  0x4f   : > { %v2027_v28 = vld [vmem:[#allocation3] sm:$0xf]  ;;  %v2609_v29 = vld [vmem:[#allocation3 + $0xc] sm:$0xf0]  ;;  %v2476_v43 = vor.u32 %v2721_v27, %v2475_v25  ;;  %1258 = vmatpush.bf16.msra.mxu1 %v2220_v38  ;;  %v2317_v1 = vld [vmem:[%s3174_s6 + $0x1d0] sm:$0xf0] }
  0x50   : > { %v3251_v48 = vor.u32 %v2609_v29, %v2027_v28  ;;  %1287 = vmatpush.bf16.msra.mxu2 %v2348_v39  ;;  %v2707_v2 = vld [vmem:[%s3174_s6 + $0x2a4] sm:$0xf]  ;;  %v2429_v3 = vld [vmem:[%s3174_s6 + $0x2b0] sm:$0xf0]  ;;  %v2320_v7 = vor.u32 %v2679_v63, %v2317_v1  ;;  %v2043_v19 = vld [vmem:[#allocation3 + $0x20] sm:$0xf] }
  0x51   : > { %1316 = vmatpush.bf16.msra.mxu3 %v2476_v43  ;;  %v2739_v4 = vld [vmem:[%s3174_s6 + $0x3a4] sm:$0xf]  ;;  %v2557_v5 = vld [vmem:[%s3174_s6 + $0x3b0] sm:$0xf0]  ;;  %v2432_v8 = vor.u32 %v2707_v2, %v2429_v3  ;;  %v2613_v20 = vld [vmem:[#allocation3 + $0x2c] sm:$0xf0] }
  0x52   : > { %1230 = vmatmul.bf16.vlgmr.msra.gmra.mxu0 %v3251_v48  ;;  %1259 = vmatmul.bf16.vlgmr.msra.gmra.mxu1 %v3256_v53  ;;  %v2643_v9 = vld [vmem:[%s3174_s6 + $0xa4] sm:$0xf]  ;;  %v2173_v10 = vld [vmem:[%s3174_s6 + $0xb0] sm:$0xf0]  ;;  %v2560_v12 = vor.u32 %v2739_v4, %v2557_v5  ;;  %v2051_v32 = vld [vmem:[#allocation3 + $0x28] sm:$0xf] }
  0x53   : > { %1288 = vmatmul.bf16.vlgmr.msra.gmra.mxu2 %v3258_v54  ;;  %1338 = vmatpush.bf16.msrb.mxu0 %v2208_v58  ;;  %v2675_v11 = vld [vmem:[%s3174_s6 + $0x1a4] sm:$0xf]  ;;  %v2301_v13 = vld [vmem:[%s3174_s6 + $0x1b0] sm:$0xf0]  ;;  %v2176_v18 = vor.u32 %v2643_v9, %v2173_v10  ;;  %v2614_v35 = vld [vmem:[#allocation3 + $0x34] sm:$0xf0] }
  0x54   : > { %1396 = vmatpush.bf16.msrb.mxu2 %v2464_v44  ;;  %1317 = vmatmul.bf16.vlgmr.msra.gmra.mxu3 %v3262_v57  ;;  %v2703_v14 = vld [vmem:[%s3174_s6 + $0x284] sm:$0xf]  ;;  %v2413_v15 = vld [vmem:[%s3174_s6 + $0x290] sm:$0xf0]  ;;  %v2304_v21 = vor.u32 %v2675_v11, %v2301_v13  ;;  %v2612_v36 = vld [vmem:[#allocation3 + $0x2c] sm:$0xf]  ;;  %v3295_v44 = vor.u32 %v2613_v20, %v2043_v19  ;;  %v3302_v51 = vor.u32 %v2614_v35, %v2051_v32 }
  0x55   : > { %1425 = vmatpush.bf16.msrb.mxu3 %v2592_v49  ;;  %1367 = vmatpush.bf16.msrb.mxu1 %v2336_v59  ;;  %v2735_v16 = vld [vmem:[%s3174_s6 + $0x384] sm:$0xf]  ;;  %v2541_v17 = vld [vmem:[%s3174_s6 + $0x390] sm:$0xf0]  ;;  %v2416_v22 = vor.u32 %v2703_v14, %v2413_v15  ;;  %v2053_v37 = vld [vmem:[#allocation3 + $0x38] sm:$0xf0] }
  0x56   : > { %v2639_v23 = vld [vmem:[%s3174_s6 + $0x84] sm:$0xf]  ;;  %v2157_v24 = vld [vmem:[%s3174_s6 + $0x90] sm:$0xf0]  ;;  %v2544_v28 = vor.u32 %v2735_v16, %v2541_v17  ;;  %v3306_v56 = vor.u32 %v2612_v36, %v2053_v37 }
  0x57   : > { %1339 = vmatpush.bf16.msrb.mxu0 %v2192_v6  ;;  %v2671_v25 = vld [vmem:[%s3174_s6 + $0x184] sm:$0xf]  ;;  %v2045_v27 = vld [vmem:[#allocation3 + $0x30] sm:$0xf0]  ;;  %v2160_v38 = vor.u32 %v2639_v23, %v2157_v24 }
  0x58   : > { %1397 = vmatpush.bf16.msrb.mxu2 %v2448_v60  ;;  %v2611_v26 = vld [vmem:[#allocation3 + $0x24] sm:$0xf]  ;;  %v2285_v29 = vld [vmem:[%s3174_s6 + $0x190] sm:$0xf0] }
  0x59   : > { %1426 = vmatpush.bf16.msrb.mxu3 %v2576_v0  ;;  %1368 = vmatpush.bf16.msrb.mxu1 %v2320_v7  ;;  %v2699_v30 = vld [vmem:[%s3174_s6 + $0x264] sm:$0xf]  ;;  %v2397_v31 = vld [vmem:[%s3174_s6 + $0x270] sm:$0xf0]  ;;  %v2288_v39 = vor.u32 %v2671_v25, %v2285_v29  ;;  %v3300_v50 = vor.u32 %v2611_v26, %v2045_v27  ;;  %v2059_v26 = vld [vmem:[#allocation3 + $0x40] sm:$0xf] }
  0x5a   : > { %v2731_v33 = vld [vmem:[%s3174_s6 + $0x364] sm:$0xf]  ;;  %v2525_v34 = vld [vmem:[%s3174_s6 + $0x370] sm:$0xf0]  ;;  %v2400_v40 = vor.u32 %v2699_v30, %v2397_v31  ;;  %v2617_v27 = vld [vmem:[#allocation3 + $0x4c] sm:$0xf0] }
  0x5b   : > { %1340 = vmatpush.bf16.msrb.mxu0 %v2176_v18  ;;  %v2635_v41 = vld [vmem:[%s3174_s6 + $0x64] sm:$0xf]  ;;  %v2141_v42 = vld [vmem:[%s3174_s6 + $0x70] sm:$0xf0]  ;;  %v2528_v45 = vor.u32 %v2731_v33, %v2525_v34  ;;  %v2067_v30 = vld [vmem:[#allocation3 + $0x48] sm:$0xf]  ;;  %v3332_v36 = vor.u32 %v2617_v27, %v2059_v26 }
  0x5c   : > { %1398 = vmatpush.bf16.msrb.mxu2 %v2432_v8  ;;  %v2667_v43 = vld [vmem:[%s3174_s6 + $0x164] sm:$0xf]  ;;  %v2269_v46 = vld [vmem:[%s3174_s6 + $0x170] sm:$0xf0]  ;;  %v2144_v58 = vor.u32 %v2635_v41, %v2141_v42  ;;  %v2618_v31 = vld [vmem:[#allocation3 + $0x54] sm:$0xf0] }
  0x5d   : > { %1427 = vmatpush.bf16.msrb.mxu3 %v2560_v12  ;;  %1369 = vmatpush.bf16.msrb.mxu1 %v2304_v21  ;;  %v2695_v47 = vld [vmem:[%s3174_s6 + $0x244] sm:$0xf]  ;;  %v2381_v49 = vld [vmem:[%s3174_s6 + $0x250] sm:$0xf0]  ;;  %v2272_v59 = vor.u32 %v2667_v43, %v2269_v46  ;;  %v2616_v33 = vld [vmem:[#allocation3 + $0x4c] sm:$0xf] }
  0x5e   : > { %v2727_v52 = vld [vmem:[%s3174_s6 + $0x344] sm:$0xf]  ;;  %v2509_v55 = vld [vmem:[%s3174_s6 + $0x350] sm:$0xf0]  ;;  %v2384_v60 = vor.u32 %v2695_v47, %v2381_v49  ;;  %v2069_v34 = vld [vmem:[#allocation3 + $0x58] sm:$0xf0] }
  0x5f   : > { %1341 = vmatpush.bf16.msrb.mxu0 %v2160_v38  ;;  %v2631_v61 = vld [vmem:[%s3174_s6 + $0x44] sm:$0xf]  ;;  %v2125_v62 = vld [vmem:[%s3174_s6 + $0x50] sm:$0xf0]  ;;  %v2512_v63 = vor.u32 %v2727_v52, %v2509_v55  ;;  %v3336_v38 = vor.u32 %v2618_v31, %v2067_v30  ;;  %v2718_v41 = vld [vmem:[%s3174_s6 + $0x2f4] sm:$0xf0] }
  0x60   : > { %1399 = vmatpush.bf16.msrb.mxu2 %v2416_v22  ;;  %v2663_v0 = vld [vmem:[%s3174_s6 + $0x144] sm:$0xf]  ;;  %v2253_v1 = vld [vmem:[%s3174_s6 + $0x150] sm:$0xf0]  ;;  %v2128_v2 = vor.u32 %v2631_v61, %v2125_v62  ;;  %v2595_v42 = vld [vmem:[%s3174_s6 + $0x3e8] sm:$0xf] }
  0x61   : > { %1428 = vmatpush.bf16.msrb.mxu3 %v2544_v28  ;;  %1370 = vmatpush.bf16.msrb.mxu1 %v2288_v39  ;;  %v2691_v3 = vld [vmem:[%s3174_s6 + $0x224] sm:$0xf]  ;;  %v2365_v4 = vld [vmem:[%s3174_s6 + $0x230] sm:$0xf0]  ;;  %v2256_v6 = vor.u32 %v2663_v0, %v2253_v1  ;;  %v3338_v39 = vor.u32 %v2616_v33, %v2069_v34  ;;  %v2211_v46 = vld [vmem:[%s3174_s6 + $0xe8] sm:$0xf] }
  0x62   : > { %1235 = vmatmul.bf16.gmra.mxu0 %v3295_v44  ;;  %1264 = vmatmul.bf16.gmra.mxu1 %v3300_v50  ;;  %v2723_v5 = vld [vmem:[%s3174_s6 + $0x324] sm:$0xf]  ;;  %v2368_v7 = vor.u32 %v2691_v3, %v2365_v4  ;;  %v2493_v8 = vld [vmem:[%s3174_s6 + $0x330] sm:$0xf0]  ;;  %v2654_v47 = vld [vmem:[%s3174_s6 + $0xf4] sm:$0xf0] }
  0x63   : > { %1293 = vmatmul.bf16.gmra.mxu2 %v3302_v51  ;;  %1342 = vmatpush.bf16.msrb.mxu0 %v2144_v58  ;;  %v2627_v9 = vld [vmem:[%s3174_s6 + $0x24] sm:$0xf]  ;;  %v2109_v10 = vld [vmem:[%s3174_s6 + $0x30] sm:$0xf0]  ;;  %v2496_v11 = vor.u32 %v2723_v5, %v2493_v8  ;;  %v2212_v52 = vor.u32 %v2654_v47, %v2211_v46  ;;  %v2339_v55 = vld [vmem:[%s3174_s6 + $0x1e8] sm:$0xf] }
  0x64   : > { %1400 = vmatpush.bf16.msrb.mxu2 %v2400_v40  ;;  %1322 = vmatmul.bf16.gmra.mxu3 %v3306_v56  ;;  %v2659_v12 = vld [vmem:[%s3174_s6 + $0x124] sm:$0xf]  ;;  %v2237_v13 = vld [vmem:[%s3174_s6 + $0x130] sm:$0xf0]  ;;  %v2112_v18 = vor.u32 %v2627_v9, %v2109_v10  ;;  %v2467_v40 = vld [vmem:[%s3174_s6 + $0x2e8] sm:$0xf] }
  0x65   : > { %1429 = vmatpush.bf16.msrb.mxu3 %v2528_v45  ;;  %1371 = vmatpush.bf16.msrb.mxu1 %v2272_v59  ;;  %v2687_v14 = vld [vmem:[%s3174_s6 + $0x204] sm:$0xf]  ;;  %v2349_v15 = vld [vmem:[%s3174_s6 + $0x210] sm:$0xf0]  ;;  %v2240_v19 = vor.u32 %v2659_v12, %v2237_v13  ;;  %v2468_v43 = vor.u32 %v2718_v41, %v2467_v40  ;;  %v2750_v45 = vld [vmem:[%s3174_s6 + $0x3f4] sm:$0xf0] }
  0x66   : > { %v2719_v16 = vld [vmem:[%s3174_s6 + $0x304] sm:$0xf]  ;;  %v2477_v17 = vld [vmem:[%s3174_s6 + $0x310] sm:$0xf0]  ;;  %v2352_v20 = vor.u32 %v2687_v14, %v2349_v15  ;;  %v2596_v49 = vor.u32 %v2750_v45, %v2595_v42  ;;  %v2686_v58 = vld [vmem:[%s3174_s6 + $0x1f4] sm:$0xf0] }
  0x67   : > { %1343 = vmatpush.bf16.msrb.mxu0 %v2128_v2  ;;  %v2623_v21 = vld [vmem:[%s3174_s6 + $0x4] sm:$0xf]  ;;  %v2093_v22 = vld [vmem:[%s3174_s6 + $0x10] sm:$0xf0]  ;;  %v2480_v23 = vor.u32 %v2719_v16, %v2477_v17  ;;  %v2451_v59 = vld [vmem:[%s3174_s6 + $0x2c8] sm:$0xf] }
  0x68   : > { %1401 = vmatpush.bf16.msrb.mxu2 %v2384_v60  ;;  %v2655_v24 = vld [vmem:[%s3174_s6 + $0x104] sm:$0xf]  ;;  %v2221_v25 = vld [vmem:[%s3174_s6 + $0x110] sm:$0xf0]  ;;  %v2096_v32 = vor.u32 %v2623_v21, %v2093_v22  ;;  %v2340_v60 = vor.u32 %v2686_v58, %v2339_v55  ;;  %v2714_v61 = vld [vmem:[%s3174_s6 + $0x2d4] sm:$0xf0] }
  0x69   : > { %1430 = vmatpush.bf16.msrb.mxu3 %v2512_v63  ;;  %1372 = vmatpush.bf16.msrb.mxu1 %v2256_v6  ;;  %v2615_v28 = vld [vmem:[#allocation3 + $0x44] sm:$0xf]  ;;  %v2061_v29 = vld [vmem:[#allocation3 + $0x50] sm:$0xf0]  ;;  %v2224_v35 = vor.u32 %v2655_v24, %v2221_v25  ;;  %v2579_v62 = vld [vmem:[%s3174_s6 + $0x3c8] sm:$0xf]  ;;  %v2452_v0 = vor.u32 %v2714_v61, %v2451_v59 }
  0x6a   : > { %v3334_v37 = vor.u32 %v2615_v28, %v2061_v29  ;;  %v2746_v63 = vld [vmem:[%s3174_s6 + $0x3d4] sm:$0xf0]  ;;  %v2195_v2 = vld [vmem:[%s3174_s6 + $0xc8] sm:$0xf]  ;;  %v2075_v8 = vld [vmem:[#allocation3 + $0x60] sm:$0xf] }
  0x6b   : > { %1344 = vmatpush.bf16.msrb.mxu0 %v2112_v18  ;;  %v2580_v1 = vor.u32 %v2746_v63, %v2579_v62  ;;  %v2650_v3 = vld [vmem:[%s3174_s6 + $0xd4] sm:$0xf0]  ;;  %v2323_v4 = vld [vmem:[%s3174_s6 + $0x1c8] sm:$0xf]  ;;  %v2621_v9 = vld [vmem:[#allocation3 + $0x6c] sm:$0xf0] }
  0x6c   : > { %1402 = vmatpush.bf16.msrb.mxu2 %v2368_v7  ;;  %v2196_v5 = vor.u32 %v2650_v3, %v2195_v2  ;;  %v2682_v6 = vld [vmem:[%s3174_s6 + $0x1d4] sm:$0xf0]  ;;  %v2619_v10 = vld [vmem:[#allocation3 + $0x64] sm:$0xf]  ;;  %v2083_v12 = vld [vmem:[#allocation3 + $0x68] sm:$0xf]  ;;  %v3360_v16 = vor.u32 %v2621_v9, %v2075_v8 }
  0x6d   : > { %1431 = vmatpush.bf16.msrb.mxu3 %v2496_v11  ;;  %1373 = vmatpush.bf16.msrb.mxu1 %v2240_v19  ;;  %v2324_v7 = vor.u32 %v2682_v6, %v2323_v4  ;;  %v2077_v11 = vld [vmem:[#allocation3 + $0x70] sm:$0xf0]  ;;  %v2622_v13 = vld [vmem:[#allocation3 + $0x74] sm:$0xf0]  ;;  %v2620_v14 = vld [vmem:[#allocation3 + $0x6c] sm:$0xf] }
  0x6e   : > { %v2085_v15 = vld [vmem:[#allocation3 + $0x78] sm:$0xf0]  ;;  %v3362_v17 = vor.u32 %v2619_v10, %v2077_v11  ;;  %v3364_v18 = vor.u32 %v2622_v13, %v2083_v12  ;;  %v2710_v21 = vld [vmem:[%s3174_s6 + $0x2b4] sm:$0xf0]  ;;  %v2563_v22 = vld [vmem:[%s3174_s6 + $0x3a8] sm:$0xf] }
  0x6f   : > { %1345 = vmatpush.bf16.msrb.mxu0 %v2096_v32  ;;  %v3366_v19 = vor.u32 %v2620_v14, %v2085_v15  ;;  %v2742_v24 = vld [vmem:[%s3174_s6 + $0x3b4] sm:$0xf0]  ;;  %v2179_v25 = vld [vmem:[%s3174_s6 + $0xa8] sm:$0xf] }
  0x70   : > { %1403 = vmatpush.bf16.msrb.mxu2 %v2352_v20  ;;  %v2435_v20 = vld [vmem:[%s3174_s6 + $0x2a8] sm:$0xf]  ;;  %v2646_v26 = vld [vmem:[%s3174_s6 + $0xb4] sm:$0xf0]  ;;  %v2564_v27 = vor.u32 %v2742_v24, %v2563_v22 }
  0x71   : > { %1432 = vmatpush.bf16.msrb.mxu3 %v2480_v23  ;;  %1374 = vmatpush.bf16.msrb.mxu1 %v2224_v35  ;;  %v2436_v23 = vor.u32 %v2710_v21, %v2435_v20  ;;  %v2180_v28 = vor.u32 %v2646_v26, %v2179_v25  ;;  %v2307_v29 = vld [vmem:[%s3174_s6 + $0x1a8] sm:$0xf]  ;;  %v2678_v30 = vld [vmem:[%s3174_s6 + $0x1b4] sm:$0xf0] }
  0x72   : > { %1240 = vmatmul.bf16.gmra.mxu0 %v3332_v36  ;;  %1269 = vmatmul.bf16.gmra.mxu1 %v3334_v37  ;;  %v2419_v31 = vld [vmem:[%s3174_s6 + $0x288] sm:$0xf]  ;;  %v2308_v32 = vor.u32 %v2678_v30, %v2307_v29  ;;  %v2706_v33 = vld [vmem:[%s3174_s6 + $0x294] sm:$0xf0] }
  0x73   : > { %1298 = vmatmul.bf16.gmra.mxu2 %v3336_v38  ;;  %1454 = vmatpush.bf16.msra.mxu0 %v2212_v52  ;;  %v2547_v34 = vld [vmem:[%s3174_s6 + $0x388] sm:$0xf]  ;;  %v2738_v35 = vld [vmem:[%s3174_s6 + $0x394] sm:$0xf0]  ;;  %v2420_v40 = vor.u32 %v2706_v33, %v2419_v31 }
  0x74   : > { %1327 = vmatmul.bf16.gmra.mxu3 %v3338_v39  ;;  %1512 = vmatpush.bf16.msra.mxu2 %v2468_v43  ;;  %v2548_v41 = vor.u32 %v2738_v35, %v2547_v34  ;;  %v2163_v42 = vld [vmem:[%s3174_s6 + $0x88] sm:$0xf]  ;;  %v2642_v43 = vld [vmem:[%s3174_s6 + $0x94] sm:$0xf0] }
  0x75   : > { %1541 = vmatpush.bf16.msra.mxu3 %v2596_v49  ;;  %1483 = vmatpush.bf16.msra.mxu1 %v2340_v60  ;;  %v2291_v45 = vld [vmem:[%s3174_s6 + $0x188] sm:$0xf]  ;;  %v2164_v46 = vor.u32 %v2642_v43, %v2163_v42  ;;  %v2674_v47 = vld [vmem:[%s3174_s6 + $0x194] sm:$0xf0] }
  0x76   : > { %v2292_v49 = vor.u32 %v2674_v47, %v2291_v45  ;;  %v2403_v52 = vld [vmem:[%s3174_s6 + $0x268] sm:$0xf]  ;;  %v2702_v55 = vld [vmem:[%s3174_s6 + $0x274] sm:$0xf0] }
  0x77   : > { %1455 = vmatpush.bf16.msra.mxu0 %v2196_v5  ;;  %v2531_v58 = vld [vmem:[%s3174_s6 + $0x368] sm:$0xf]  ;;  %v2404_v59 = vor.u32 %v2702_v55, %v2403_v52  ;;  %v2734_v60 = vld [vmem:[%s3174_s6 + $0x374] sm:$0xf0]  ;;  %v2716_v52 = vld [vmem:[%s3174_s6 + $0x2ec] sm:$0xf] }
  0x78   : > { %1513 = vmatpush.bf16.msra.mxu2 %v2452_v0  ;;  %v2147_v61 = vld [vmem:[%s3174_s6 + $0x68] sm:$0xf]  ;;  %v2638_v62 = vld [vmem:[%s3174_s6 + $0x74] sm:$0xf0]  ;;  %v2532_v63 = vor.u32 %v2734_v60, %v2531_v58  ;;  %v2469_v55 = vld [vmem:[%s3174_s6 + $0x2f8] sm:$0xf0] }
  0x79   : > { %1542 = vmatpush.bf16.msra.mxu3 %v2580_v1  ;;  %1484 = vmatpush.bf16.msra.mxu1 %v2324_v7  ;;  %v2148_v0 = vor.u32 %v2638_v62, %v2147_v61  ;;  %v2275_v1 = vld [vmem:[%s3174_s6 + $0x168] sm:$0xf]  ;;  %v2670_v2 = vld [vmem:[%s3174_s6 + $0x174] sm:$0xf0]  ;;  %v2748_v58 = vld [vmem:[%s3174_s6 + $0x3ec] sm:$0xf] }
  0x7a   : > { %v2387_v3 = vld [vmem:[%s3174_s6 + $0x248] sm:$0xf]  ;;  %v2276_v4 = vor.u32 %v2670_v2, %v2275_v1  ;;  %v2698_v5 = vld [vmem:[%s3174_s6 + $0x254] sm:$0xf0]  ;;  %v2597_v60 = vld [vmem:[%s3174_s6 + $0x3f8] sm:$0xf0] }
  0x7b   : > { %1456 = vmatpush.bf16.msra.mxu0 %v2180_v28  ;;  %v2515_v6 = vld [vmem:[%s3174_s6 + $0x348] sm:$0xf]  ;;  %v2730_v7 = vld [vmem:[%s3174_s6 + $0x354] sm:$0xf0]  ;;  %v2388_v8 = vor.u32 %v2698_v5, %v2387_v3  ;;  %v2600_v61 = vor.u32 %v2748_v58, %v2597_v60  ;;  %v2652_v62 = vld [vmem:[%s3174_s6 + $0xec] sm:$0xf] }
  0x7c   : > { %1514 = vmatpush.bf16.msra.mxu2 %v2436_v23  ;;  %v2516_v9 = vor.u32 %v2730_v7, %v2515_v6  ;;  %v2131_v10 = vld [vmem:[%s3174_s6 + $0x48] sm:$0xf]  ;;  %v2634_v11 = vld [vmem:[%s3174_s6 + $0x54] sm:$0xf0]  ;;  %v2341_v2 = vld [vmem:[%s3174_s6 + $0x1f8] sm:$0xf0] }
  0x7d   : > { %1543 = vmatpush.bf16.msra.mxu3 %v2564_v27  ;;  %1485 = vmatpush.bf16.msra.mxu1 %v2308_v32  ;;  %v2259_v12 = vld [vmem:[%s3174_s6 + $0x148] sm:$0xf]  ;;  %v2132_v13 = vor.u32 %v2634_v11, %v2131_v10  ;;  %v2666_v14 = vld [vmem:[%s3174_s6 + $0x154] sm:$0xf0]  ;;  %v2712_v3 = vld [vmem:[%s3174_s6 + $0x2cc] sm:$0xf] }
  0x7e   : > { %v2260_v15 = vor.u32 %v2666_v14, %v2259_v12  ;;  %v2371_v20 = vld [vmem:[%s3174_s6 + $0x228] sm:$0xf]  ;;  %v2694_v21 = vld [vmem:[%s3174_s6 + $0x234] sm:$0xf0]  ;;  %v2744_v7 = vld [vmem:[%s3174_s6 + $0x3cc] sm:$0xf] }
  0x7f   : > { %1457 = vmatpush.bf16.msra.mxu0 %v2164_v46  ;;  %v2499_v22 = vld [vmem:[%s3174_s6 + $0x328] sm:$0xf]  ;;  %v2372_v23 = vor.u32 %v2694_v21, %v2371_v20  ;;  %v2726_v24 = vld [vmem:[%s3174_s6 + $0x334] sm:$0xf0]  ;;  %v2648_v10 = vld [vmem:[%s3174_s6 + $0xcc] sm:$0xf] }
  0x80   : > { %1515 = vmatpush.bf16.msra.mxu2 %v2420_v40  ;;  %v2115_v25 = vld [vmem:[%s3174_s6 + $0x28] sm:$0xf]  ;;  %v2630_v26 = vld [vmem:[%s3174_s6 + $0x34] sm:$0xf0]  ;;  %v2500_v27 = vor.u32 %v2726_v24, %v2499_v22  ;;  %v2197_v11 = vld [vmem:[%s3174_s6 + $0xd8] sm:$0xf0] }
  0x81   : > { %1544 = vmatpush.bf16.msra.mxu3 %v2548_v41  ;;  %1486 = vmatpush.bf16.msra.mxu1 %v2292_v49  ;;  %v2116_v28 = vor.u32 %v2630_v26, %v2115_v25  ;;  %v2243_v29 = vld [vmem:[%s3174_s6 + $0x128] sm:$0xf]  ;;  %v2662_v30 = vld [vmem:[%s3174_s6 + $0x134] sm:$0xf0]  ;;  %v2680_v12 = vld [vmem:[%s3174_s6 + $0x1cc] sm:$0xf] }
  0x82   : > { %1245 = vmatmul.bf16.gmra.mxu0 %v3360_v16  ;;  %1274 = vmatmul.bf16.gmra.mxu1 %v3362_v17  ;;  %v2355_v31 = vld [vmem:[%s3174_s6 + $0x208] sm:$0xf]  ;;  %v2244_v32 = vor.u32 %v2662_v30, %v2243_v29  ;;  %v2690_v33 = vld [vmem:[%s3174_s6 + $0x214] sm:$0xf0]  ;;  %v2325_v14 = vld [vmem:[%s3174_s6 + $0x1d8] sm:$0xf0] }
  0x83   : > { %1303 = vmatmul.bf16.gmra.mxu2 %v3364_v18  ;;  %1458 = vmatpush.bf16.msra.mxu0 %v2148_v0  ;;  %v2483_v34 = vld [vmem:[%s3174_s6 + $0x308] sm:$0xf]  ;;  %v2722_v35 = vld [vmem:[%s3174_s6 + $0x314] sm:$0xf0]  ;;  %v2356_v40 = vor.u32 %v2690_v33, %v2355_v31  ;;  %v2684_v0 = vld [vmem:[%s3174_s6 + $0x1ec] sm:$0xf]  ;;  %v2328_v21 = vor.u32 %v2680_v12, %v2325_v14 }
  0x84   : > { %1332 = vmatmul.bf16.gmra.mxu3 %v3366_v19  ;;  %1516 = vmatpush.bf16.msra.mxu2 %v2404_v59  ;;  %v2484_v41 = vor.u32 %v2722_v35, %v2483_v34  ;;  %v2099_v42 = vld [vmem:[%s3174_s6 + $0x8] sm:$0xf]  ;;  %v2626_v43 = vld [vmem:[%s3174_s6 + $0x14] sm:$0xf0]  ;;  %v2472_v59 = vor.u32 %v2716_v52, %v2469_v55  ;;  %v2344_v5 = vor.u32 %v2684_v0, %v2341_v2  ;;  %v2437_v20 = vld [vmem:[%s3174_s6 + $0x2b8] sm:$0xf0] }
  0x85   : > { %1545 = vmatpush.bf16.msra.mxu3 %v2532_v63  ;;  %1487 = vmatpush.bf16.msra.mxu1 %v2276_v4  ;;  %v2227_v45 = vld [vmem:[%s3174_s6 + $0x108] sm:$0xf]  ;;  %v2100_v46 = vor.u32 %v2626_v43, %v2099_v42  ;;  %v2658_v47 = vld [vmem:[%s3174_s6 + $0x114] sm:$0xf0]  ;;  %v2213_v63 = vld [vmem:[%s3174_s6 + $0xf8] sm:$0xf0] }
  0x86   : > { %v2228_v49 = vor.u32 %v2658_v47, %v2227_v45  ;;  %v2216_v1 = vor.u32 %v2652_v62, %v2213_v63  ;;  %v2453_v4 = vld [vmem:[%s3174_s6 + $0x2d8] sm:$0xf0]  ;;  %v2644_v26 = vld [vmem:[%s3174_s6 + $0xac] sm:$0xf] }
  0x87   : > { %1459 = vmatpush.bf16.msra.mxu0 %v2132_v13  ;;  %v2456_v6 = vor.u32 %v2712_v3, %v2453_v4  ;;  %v2200_v13 = vor.u32 %v2648_v10, %v2197_v11  ;;  %v2565_v24 = vld [vmem:[%s3174_s6 + $0x3b8] sm:$0xf0]  ;;  %v2704_v31 = vld [vmem:[%s3174_s6 + $0x28c] sm:$0xf] }
  0x88   : > { %1517 = vmatpush.bf16.msra.mxu2 %v2388_v8  ;;  %v2581_v8 = vld [vmem:[%s3174_s6 + $0x3d8] sm:$0xf0]  ;;  %v2736_v35 = vld [vmem:[%s3174_s6 + $0x38c] sm:$0xf] }
  0x89   : > { %1546 = vmatpush.bf16.msra.mxu3 %v2516_v9  ;;  %1488 = vmatpush.bf16.msra.mxu1 %v2260_v15  ;;  %v2584_v9 = vor.u32 %v2744_v7, %v2581_v8  ;;  %v2708_v15 = vld [vmem:[%s3174_s6 + $0x2ac] sm:$0xf]  ;;  %v2309_v30 = vld [vmem:[%s3174_s6 + $0x1b8] sm:$0xf0] }
  0x8a   : > { %v2440_v22 = vor.u32 %v2708_v15, %v2437_v20  ;;  %v2165_v47 = vld [vmem:[%s3174_s6 + $0x98] sm:$0xf0]  ;;  %v2700_v58 = vld [vmem:[%s3174_s6 + $0x26c] sm:$0xf] }
  0x8b   : > { %1460 = vmatpush.bf16.msra.mxu0 %v2116_v28  ;;  %v2676_v28 = vld [vmem:[%s3174_s6 + $0x1ac] sm:$0xf]  ;;  %v2293_v55 = vld [vmem:[%s3174_s6 + $0x198] sm:$0xf0] }
  0x8c   : > { %1518 = vmatpush.bf16.msra.mxu2 %v2372_v23  ;;  %v2740_v23 = vld [vmem:[%s3174_s6 + $0x3ac] sm:$0xf]  ;;  %v2312_v33 = vor.u32 %v2676_v28, %v2309_v30  ;;  %v2533_v63 = vld [vmem:[%s3174_s6 + $0x378] sm:$0xf0] }
  0x8d   : > { %1547 = vmatpush.bf16.msra.mxu3 %v2500_v27  ;;  %1489 = vmatpush.bf16.msra.mxu1 %v2244_v32  ;;  %v2568_v25 = vor.u32 %v2740_v23, %v2565_v24  ;;  %v2181_v27 = vld [vmem:[%s3174_s6 + $0xb8] sm:$0xf0]  ;;  %v2732_v62 = vld [vmem:[%s3174_s6 + $0x36c] sm:$0xf] }
  0x8e   : > { %v2184_v29 = vor.u32 %v2644_v26, %v2181_v27  ;;  %v2421_v32 = vld [vmem:[%s3174_s6 + $0x298] sm:$0xf0]  ;;  %v2636_v8 = vld [vmem:[%s3174_s6 + $0x6c] sm:$0xf] }
  0x8f   : > { %1461 = vmatpush.bf16.msra.mxu0 %v2100_v46  ;;  %v2424_v34 = vor.u32 %v2704_v31, %v2421_v32  ;;  %v2640_v46 = vld [vmem:[%s3174_s6 + $0x8c] sm:$0xf]  ;;  %v2277_v12 = vld [vmem:[%s3174_s6 + $0x178] sm:$0xf0] }
  0x90   : > { %1519 = vmatpush.bf16.msra.mxu2 %v2356_v40  ;;  %v2549_v40 = vld [vmem:[%s3174_s6 + $0x398] sm:$0xf0]  ;;  %v2168_v52 = vor.u32 %v2640_v46, %v2165_v47  ;;  %v2668_v10 = vld [vmem:[%s3174_s6 + $0x16c] sm:$0xf] }
  0x91   : > { %1548 = vmatpush.bf16.msra.mxu3 %v2484_v41  ;;  %1490 = vmatpush.bf16.msra.mxu1 %v2228_v49  ;;  %v2552_v41 = vor.u32 %v2736_v35, %v2549_v40  ;;  %v2672_v49 = vld [vmem:[%s3174_s6 + $0x18c] sm:$0xf]  ;;  %v2389_v14 = vld [vmem:[%s3174_s6 + $0x258] sm:$0xf0]  ;;  %v2280_v15 = vor.u32 %v2668_v10, %v2277_v12 }
  0x92   : > { %1346 = vmatmul.bf16.vlgmr.msrb.gmra.mxu0 %v3251_v48  ;;  %1375 = vmatmul.bf16.vlgmr.msrb.gmra.mxu1 %v3256_v53  ;;  %v2296_v60 = vor.u32 %v2672_v49, %v2293_v55  ;;  %v2632_v31 = vld [vmem:[%s3174_s6 + $0x4c] sm:$0xf]  ;;  %v2133_v32 = vld [vmem:[%s3174_s6 + $0x58] sm:$0xf0] }
  0x93   : > { %1404 = vmatmul.bf16.vlgmr.msrb.gmra.mxu2 %v3258_v54  ;;  %1570 = vmatpush.bf16.msrb.mxu0 %v2216_v1  ;;  %v2536_v1 = vor.u32 %v2732_v62, %v2533_v63  ;;  %v2261_v35 = vld [vmem:[%s3174_s6 + $0x158] sm:$0xf0]  ;;  %v2692_v40 = vld [vmem:[%s3174_s6 + $0x22c] sm:$0xf] }
  0x94   : > { %1433 = vmatmul.bf16.vlgmr.msrb.gmra.mxu3 %v3262_v57  ;;  %1628 = vmatpush.bf16.msrb.mxu2 %v2472_v59  ;;  %v2405_v59 = vld [vmem:[%s3174_s6 + $0x278] sm:$0xf0]  ;;  %v2628_v62 = vld [vmem:[%s3174_s6 + $0x2c] sm:$0xf] }
  0x95   : > { %1657 = vmatpush.bf16.msrb.mxu3 %v2600_v61  ;;  %1599 = vmatpush.bf16.msrb.mxu1 %v2344_v5  ;;  %v2408_v61 = vor.u32 %v2700_v58, %v2405_v59  ;;  %v2501_v46 = vld [vmem:[%s3174_s6 + $0x338] sm:$0xf0]  ;;  %v2624_v12 = vld [vmem:[%s3174_s6 + $0xc] sm:$0xf] }
  0x96   : > { %v2117_v63 = vld [vmem:[%s3174_s6 + $0x38] sm:$0xf0] }
  0x97   : > { %1571 = vmatpush.bf16.msrb.mxu0 %v2200_v13  ;;  %v2696_v13 = vld [vmem:[%s3174_s6 + $0x24c] sm:$0xf] }
  0x98   : > { %1629 = vmatpush.bf16.msrb.mxu2 %v2456_v6  ;;  %v2392_v20 = vor.u32 %v2696_v13, %v2389_v14  ;;  %v2101_v13 = vld [vmem:[%s3174_s6 + $0x18] sm:$0xf0]  ;;  %v2656_v14 = vld [vmem:[%s3174_s6 + $0x10c] sm:$0xf] }
  0x99   : > { %1658 = vmatpush.bf16.msrb.mxu3 %v2584_v9  ;;  %1600 = vmatpush.bf16.msrb.mxu1 %v2328_v21  ;;  %v2149_v9 = vld [vmem:[%s3174_s6 + $0x78] sm:$0xf0]  ;;  %v2728_v21 = vld [vmem:[%s3174_s6 + $0x34c] sm:$0xf] }
  0x9a   : > { %v2152_v11 = vor.u32 %v2636_v8, %v2149_v9  ;;  %v2720_v8 = vld [vmem:[%s3174_s6 + $0x30c] sm:$0xf]  ;;  %v2485_v9 = vld [vmem:[%s3174_s6 + $0x318] sm:$0xf0] }
  0x9b   : > { %1572 = vmatpush.bf16.msrb.mxu0 %v2184_v29  ;;  %v2488_v10 = vor.u32 %v2720_v8, %v2485_v9 }
  0x9c   : > { %1630 = vmatpush.bf16.msrb.mxu2 %v2440_v22  ;;  %v2517_v22 = vld [vmem:[%s3174_s6 + $0x358] sm:$0xf0] }
  0x9d   : > { %1659 = vmatpush.bf16.msrb.mxu3 %v2568_v25  ;;  %1601 = vmatpush.bf16.msrb.mxu1 %v2312_v33  ;;  %v2520_v24 = vor.u32 %v2728_v21, %v2517_v22  ;;  %v2664_v33 = vld [vmem:[%s3174_s6 + $0x14c] sm:$0xf]  ;;  %v2104_v22 = vor.u32 %v2624_v12, %v2101_v13 }
  0x9f   : > { %1573 = vmatpush.bf16.msrb.mxu0 %v2168_v52 }
  0xa0   : > { %1631 = vmatpush.bf16.msrb.mxu2 %v2424_v34  ;;  %v2136_v34 = vor.u32 %v2632_v31, %v2133_v32 }
  0xa1   : > { %1660 = vmatpush.bf16.msrb.mxu3 %v2552_v41  ;;  %1602 = vmatpush.bf16.msrb.mxu1 %v2296_v60  ;;  %v2373_v41 = vld [vmem:[%s3174_s6 + $0x238] sm:$0xf0] }
  0xa2   : > { %1351 = vmatmul.bf16.gmra.mxu0 %v3295_v44  ;;  %1380 = vmatmul.bf16.gmra.mxu1 %v3300_v50 }
  0xa3   : > { %1409 = vmatmul.bf16.gmra.mxu2 %v3302_v51  ;;  %1574 = vmatpush.bf16.msrb.mxu0 %v2152_v11 }
  0xa4   : > { %1438 = vmatmul.bf16.gmra.mxu3 %v3306_v56  ;;  %1632 = vmatpush.bf16.msrb.mxu2 %v2408_v61 }
  0xa5   : > { %1661 = vmatpush.bf16.msrb.mxu3 %v2536_v1  ;;  %1603 = vmatpush.bf16.msrb.mxu1 %v2280_v15  ;;  %v2120_v1 = vor.u32 %v2628_v62, %v2117_v63  ;;  %v1785_v63 = vld [vmem:[%s254_s10] sm:$0xf] }
  0xa7   : > { %1575 = vmatpush.bf16.msrb.mxu0 %v2136_v34 }
  0xa8   : > { %1633 = vmatpush.bf16.msrb.mxu2 %v2392_v20 }
  0xa9   : > { %1662 = vmatpush.bf16.msrb.mxu3 %v2520_v24 }
  0xab   : > { %1576 = vmatpush.bf16.msrb.mxu0 %v2120_v1  ;;  %v3531_v1 = vunpack.c.l.bf16 %v1785_v63 }
  0xad   : > { %v1788_v8 = vperm.slane %v3531_v1, 0 }
  0xaf   : > { %1577 = vmatpush.bf16.msrb.mxu0 %v2104_v22  ;;  %v3541_v12 = vperm.slane %v1788_v8, 0 }
  0xb2   : > { %1356 = vmatmul.bf16.gmra.mxu0 %v3332_v36  ;;  %1385 = vmatmul.bf16.gmra.mxu1 %v3334_v37 }
  0xb3   : > { %1414 = vmatmul.bf16.gmra.mxu2 %v3336_v38 }
  0xb4   : > { %1443 = vmatmul.bf16.gmra.mxu3 %v3338_v39 }
  0xc2   : > { %1361 = vmatmul.bf16.gmra.mxu0 %v3360_v16  ;;  %1390 = vmatmul.bf16.gmra.mxu1 %v3362_v17 }
  0xc3   : > { %1419 = vmatmul.bf16.gmra.mxu2 %v3364_v18 }
  0xc4   : > { %1448 = vmatmul.bf16.gmra.mxu3 %v3366_v19 }
  0xcf   : > { %v1231_v42 = vpop.f32.mrf.mxu0  ;;  %v1260_v43 = vpop.f32.mrf.mxu1 }
  0xd0   : > { %v1261_v45 = vadd.f32 %v1260_v43, %v1231_v42  ;;  %v2264_v42 = vor.u32 %v2664_v33, %v2261_v35  ;;  %v2376_v43 = vor.u32 %v2692_v40, %v2373_v41 }
  0xd2   : > { %1462 = vmatmul.bf16.vlgmr.msra.gmra.mxu0 %v3251_v48  ;;  %1491 = vmatmul.bf16.vlgmr.msra.gmra.mxu1 %v3256_v53 }
  0xd3   : > { %1520 = vmatmul.bf16.vlgmr.msra.gmra.mxu2 %v3258_v54  ;;  %1604 = vmatpush.bf16.msrb.mxu1 %v2264_v42 }
  0xd4   : > { %1549 = vmatmul.bf16.vlgmr.msra.gmra.mxu3 %v3262_v57  ;;  %1634 = vmatpush.bf16.msrb.mxu2 %v2376_v43 }
  0xd6   : > { %v1289_v0 = vpop.f32.mrf.mxu2 }
  0xd7   : > { %v1290_v2 = vadd.f32 %v1289_v0, %v1261_v45  ;;  %v1318_v3 = vpop.f32.mrf.mxu3  ;;  %v1233_v4 = vpop.f32.mrf.mxu0  ;;  %v2724_v45 = vld [vmem:[%s3174_s6 + $0x32c] sm:$0xf] }
  0xd8   : > { %v1262_v5 = vpop.f32.mrf.mxu1  ;;  %v2504_v49 = vor.u32 %v2724_v45, %v2501_v46  ;;  %v2660_v0 = vld [vmem:[%s3174_s6 + $0x12c] sm:$0xf] }
  0xd9   : > { %v3476_v6 = vadd.f32 %v1318_v3, %v1290_v2  ;;  %v1263_v7 = vadd.f32 %v1262_v5, %v1233_v4  ;;  %v2245_v2 = vld [vmem:[%s3174_s6 + $0x138] sm:$0xf0]  ;;  %v2688_v3 = vld [vmem:[%s3174_s6 + $0x20c] sm:$0xf] }
  0xda   : > { %1663 = vmatpush.bf16.msrb.mxu3 %v2504_v49  ;;  %v2357_v4 = vld [vmem:[%s3174_s6 + $0x218] sm:$0xf0]  ;;  %v2248_v5 = vor.u32 %v2660_v0, %v2245_v2 }
  0xdc   : > { %1605 = vmatpush.bf16.msrb.mxu1 %v2248_v5 }
  0xde   : > { %v1291_v23 = vpop.f32.mrf.mxu2  ;;  %1664 = vmatpush.bf16.msrb.mxu3 %v2488_v10  ;;  %v1789_v10 = vperm.slane %v3531_v1, 2 }
  0xdf   : > { %v1292_v25 = vadd.f32 %v1291_v23, %v1263_v7  ;;  %v1320_v26 = vpop.f32.mrf.mxu3  ;;  %v1236_v27 = vpop.f32.mrf.mxu0  ;;  %v2360_v7 = vor.u32 %v2688_v3, %v2357_v4  ;;  %v2229_v23 = vld [vmem:[%s3174_s6 + $0x118] sm:$0xf0] }
  0xe0   : > { %v1265_v28 = vpop.f32.mrf.mxu1 }
  0xe1   : > { %v3486_v29 = vadd.f32 %v1320_v26, %v1292_v25  ;;  %v1266_v30 = vadd.f32 %v1265_v28, %v1236_v27  ;;  %1635 = vmatpush.bf16.msrb.mxu2 %v2360_v7  ;;  %v2232_v25 = vor.u32 %v2656_v14, %v2229_v23 }
  0xe2   : > { %1467 = vmatmul.bf16.gmra.mxu0 %v3295_v44  ;;  %1496 = vmatmul.bf16.gmra.mxu1 %v3300_v50 }
  0xe3   : > { %1525 = vmatmul.bf16.gmra.mxu2 %v3302_v51  ;;  %1606 = vmatpush.bf16.msrb.mxu1 %v2232_v25 }
  0xe4   : > { %1554 = vmatmul.bf16.gmra.mxu3 %v3306_v56 }
  0xe6   : > { %v1294_v47 = vpop.f32.mrf.mxu2 }
  0xe7   : > { %v1295_v52 = vadd.f32 %v1294_v47, %v1266_v30  ;;  %v1323_v55 = vpop.f32.mrf.mxu3  ;;  %v1238_v58 = vpop.f32.mrf.mxu0 }
  0xe8   : > { %v1267_v59 = vpop.f32.mrf.mxu1 }
  0xe9   : > { %v3500_v60 = vadd.f32 %v1323_v55, %v1295_v52  ;;  %v1268_v61 = vadd.f32 %v1267_v59, %v1238_v58 }
  0xee   : > { %v1296_v11 = vpop.f32.mrf.mxu2 }
  0xef   : > { %v1297_v15 = vadd.f32 %v1296_v11, %v1268_v61  ;;  %v1325_v20 = vpop.f32.mrf.mxu3  ;;  %v1241_v21 = vpop.f32.mrf.mxu0 }
  0xf0   : > { %v1270_v24 = vpop.f32.mrf.mxu1 }
  0xf1   : > { %v3514_v26 = vadd.f32 %v1325_v20, %v1297_v15  ;;  %v1271_v27 = vadd.f32 %v1270_v24, %v1241_v21  ;;  %v3543_v15 = vperm.slane %v1789_v10, 0 }
  0xf2   : > { %1472 = vmatmul.bf16.gmra.mxu0 %v3332_v36  ;;  %1501 = vmatmul.bf16.gmra.mxu1 %v3334_v37 }
  0xf3   : > { %1530 = vmatmul.bf16.gmra.mxu2 %v3336_v38 }
  0xf4   : > { %1559 = vmatmul.bf16.gmra.mxu3 %v3338_v39 }
  0xf6   : > { %v1299_v28 = vpop.f32.mrf.mxu2 }
  0xf7   : > { %v1300_v30 = vadd.f32 %v1299_v28, %v1271_v27  ;;  %v1328_v31 = vpop.f32.mrf.mxu3  ;;  %v1243_v32 = vpop.f32.mrf.mxu0 }
  0xf8   : > { %v1272_v33 = vpop.f32.mrf.mxu1 }
  0xf9   : > { %v3520_v34 = vadd.f32 %v1328_v31, %v1300_v30  ;;  %v1273_v35 = vadd.f32 %v1272_v33, %v1243_v32 }
  0xfe   : > { %v1301_v40 = vpop.f32.mrf.mxu2 }
  0xff   : > { %v1302_v41 = vadd.f32 %v1301_v40, %v1273_v35  ;;  %v1330_v42 = vpop.f32.mrf.mxu3  ;;  %v1246_v43 = vpop.f32.mrf.mxu0 }
 0x100   : > { %v1275_v45 = vpop.f32.mrf.mxu1 }
 0x101   : > { %v3522_v46 = vadd.f32 %v1330_v42, %v1302_v41  ;;  %v1276_v47 = vadd.f32 %v1275_v45, %v1246_v43 }
 0x102   : > { %1477 = vmatmul.bf16.gmra.mxu0 %v3360_v16  ;;  %1506 = vmatmul.bf16.gmra.mxu1 %v3362_v17 }
 0x103   : > { %1535 = vmatmul.bf16.gmra.mxu2 %v3364_v18 }
 0x104   : > { %1564 = vmatmul.bf16.gmra.mxu3 %v3366_v19 }
 0x106   : > { %v1304_v49 = vpop.f32.mrf.mxu2 }
 0x107   : > { %v1305_v52 = vadd.f32 %v1304_v49, %v1276_v47  ;;  %v1333_v55 = vpop.f32.mrf.mxu3  ;;  %v1248_v58 = vpop.f32.mrf.mxu0 }
 0x108   : > { %v1277_v59 = vpop.f32.mrf.mxu1 }
 0x109   : > { %v3529_v61 = vadd.f32 %v1333_v55, %v1305_v52  ;;  %v1278_v62 = vadd.f32 %v1277_v59, %v1248_v58  ;;  %v1812_v59 = vadd.f32 %v3541_v12, %v3514_v26  ;;  %v1816_v26 = vadd.f32 %v3541_v12, %v3520_v34 }
 0x10e   : > { %v1306_v0 = vpop.f32.mrf.mxu2 }
 0x10f   : > { %v1307_v2 = vadd.f32 %v1306_v0, %v1278_v62  ;;  %v1335_v3 = vpop.f32.mrf.mxu3  ;;  %v1347_v4 = vpop.f32.mrf.mxu0 }
 0x110   : > { %v1376_v5 = vpop.f32.mrf.mxu1 }
 0x111   : > { %v3533_v7 = vadd.f32 %v1335_v3, %v1307_v2  ;;  %v1377_v9 = vadd.f32 %v1376_v5, %v1347_v4 }
 0x112   : > { %1578 = vmatmul.bf16.vlgmr.msrb.gmra.mxu0 %v3251_v48  ;;  %1607 = vmatmul.bf16.vlgmr.msrb.gmra.mxu1 %v3256_v53  ;;  %v1800_v53 = vadd.f32 %v3541_v12, %v3476_v6  ;;  %v1804_v6 = vadd.f32 %v3541_v12, %v3486_v29  ;;  %v1808_v29 = vadd.f32 %v3541_v12, %v3500_v60 }
 0x113   : > { %1636 = vmatmul.bf16.vlgmr.msrb.gmra.mxu2 %v3258_v54 }
 0x114   : > { %1665 = vmatmul.bf16.vlgmr.msrb.gmra.mxu3 %v3262_v57 }
 0x116   : > { %v1405_v11 = vpop.f32.mrf.mxu2 }
 0x117   : > { %v1406_v13 = vadd.f32 %v1405_v11, %v1377_v9  ;;  %v1434_v14 = vpop.f32.mrf.mxu3  ;;  %v1349_v20 = vpop.f32.mrf.mxu0 }
 0x118   : > { %v1378_v48 = vpop.f32.mrf.mxu1 }
 0x119   : > { %v1435_v21 = vadd.f32 %v1434_v14, %v1406_v13  ;;  %v1379_v23 = vadd.f32 %v1378_v48, %v1349_v20  ;;  %v1820_v20 = vadd.f32 %v3541_v12, %v3522_v46  ;;  %v1824_v46 = vadd.f32 %v3541_v12, %v3529_v61 }
 0x11b   : > { %v1801_v54 = vadd.f32 %v3543_v15, %v1435_v21 }
 0x11d   : > { %v1832_v22 = vpack.c.bf16 %v1801_v54, %v1800_v53 }
 0x11e   : > { %v1407_v24 = vpop.f32.mrf.mxu2 }
 0x11f   : > { %1848 = vst [vmem:[%s3549_s20] sm:$0xff] %v1832_v22  ;;  %v1408_v57 = vadd.f32 %v1407_v24, %v1379_v23  ;;  %v1436_v25 = vpop.f32.mrf.mxu3  ;;  %v1352_v27 = vpop.f32.mrf.mxu0 }
 0x120   : > { %v1381_v28 = vpop.f32.mrf.mxu1 }
 0x121   : > { %v1437_v30 = vadd.f32 %v1436_v25, %v1408_v57  ;;  %v1382_v32 = vadd.f32 %v1381_v28, %v1352_v27 }
 0x122   : > { %1583 = vmatmul.bf16.gmra.mxu0 %v3295_v44  ;;  %1612 = vmatmul.bf16.gmra.mxu1 %v3300_v50 }
 0x123   : > { %v1805_v31 = vadd.f32 %v3543_v15, %v1437_v30  ;;  %1641 = vmatmul.bf16.gmra.mxu2 %v3302_v51 }
 0x124   : > { %1670 = vmatmul.bf16.gmra.mxu3 %v3306_v56 }
 0x125   : > { %v1834_v33 = vpack.c.bf16 %v1805_v31, %v1804_v6 }
 0x126   : > { %v1410_v35 = vpop.f32.mrf.mxu2 }
 0x127   : > { %1850 = vst [vmem:[%s3549_s20 + $0x10] sm:$0xff] %v1834_v33  ;;  %v1411_v40 = vadd.f32 %v1410_v35, %v1382_v32  ;;  %v1439_v41 = vpop.f32.mrf.mxu3  ;;  %v1354_v42 = vpop.f32.mrf.mxu0  ;;  %v1828_v32 = vadd.f32 %v3541_v12, %v3533_v7 }
 0x128   : > { %v1383_v44 = vpop.f32.mrf.mxu1 }
 0x129   : > { %v1440_v43 = vadd.f32 %v1439_v41, %v1411_v40  ;;  %v1384_v50 = vadd.f32 %v1383_v44, %v1354_v42 }
 0x12b   : > { %v1809_v45 = vadd.f32 %v3543_v15, %v1440_v43 }
 0x12d   : > { %v1836_v47 = vpack.c.bf16 %v1809_v45, %v1808_v29 }
 0x12e   : > { %v1412_v49 = vpop.f32.mrf.mxu2 }
 0x12f   : > { %1852 = vst [vmem:[%s3549_s20 + $0x20] sm:$0xff] %v1836_v47  ;;  %v1413_v51 = vadd.f32 %v1412_v49, %v1384_v50  ;;  %v1441_v56 = vpop.f32.mrf.mxu3  ;;  %v1357_v52 = vpop.f32.mrf.mxu0 }
 0x130   : > { %v1386_v55 = vpop.f32.mrf.mxu1 }
 0x131   : > { %v1442_v58 = vadd.f32 %v1441_v56, %v1413_v51  ;;  %v1387_v60 = vadd.f32 %v1386_v55, %v1357_v52 }
 0x132   : > { %1588 = vmatmul.bf16.gmra.mxu0 %v3332_v36  ;;  %1617 = vmatmul.bf16.gmra.mxu1 %v3334_v37 }
 0x133   : > { %v1813_v62 = vadd.f32 %v3543_v15, %v1442_v58  ;;  %1646 = vmatmul.bf16.gmra.mxu2 %v3336_v38 }
 0x134   : > { %1675 = vmatmul.bf16.gmra.mxu3 %v3338_v39 }
 0x135   : > { %v1838_v63 = vpack.c.bf16 %v1813_v62, %v1812_v59 }
 0x136   : > { %v1415_v0 = vpop.f32.mrf.mxu2 }
 0x137   : > { %1854 = vst [vmem:[%s3549_s20 + $0x30] sm:$0xff] %v1838_v63  ;;  %v1416_v2 = vadd.f32 %v1415_v0, %v1387_v60  ;;  %v1444_v3 = vpop.f32.mrf.mxu3  ;;  %v1359_v4 = vpop.f32.mrf.mxu0 }
 0x138   : > { %v1388_v36 = vpop.f32.mrf.mxu1 }
 0x139   : > { %v1445_v5 = vadd.f32 %v1444_v3, %v1416_v2  ;;  %v1389_v37 = vadd.f32 %v1388_v36, %v1359_v4 }
 0x13b   : > { %v1817_v8 = vadd.f32 %v3543_v15, %v1445_v5 }
 0x13d   : > { %v1840_v9 = vpack.c.bf16 %v1817_v8, %v1816_v26 }
 0x13e   : > { %v1417_v10 = vpop.f32.mrf.mxu2 }
 0x13f   : > { %1856 = vst [vmem:[%s3549_s20 + $0x40] sm:$0xff] %v1840_v9  ;;  %v1418_v38 = vadd.f32 %v1417_v10, %v1389_v37  ;;  %v1446_v39 = vpop.f32.mrf.mxu3  ;;  %v1362_v11 = vpop.f32.mrf.mxu0 }
 0x140   : > { %v1391_v13 = vpop.f32.mrf.mxu1 }
 0x141   : > { %v1447_v14 = vadd.f32 %v1446_v39, %v1418_v38  ;;  %v1392_v34 = vadd.f32 %v1391_v13, %v1362_v11 }
 0x142   : > { %1593 = vmatmul.bf16.gmra.mxu0 %v3360_v16  ;;  %1622 = vmatmul.bf16.gmra.mxu1 %v3362_v17 }
 0x143   : > { %v1821_v48 = vadd.f32 %v3543_v15, %v1447_v14  ;;  %1651 = vmatmul.bf16.gmra.mxu2 %v3364_v18 }
 0x144   : > { %1680 = vmatmul.bf16.gmra.mxu3 %v3366_v19 }
 0x145   : > { %v1842_v21 = vpack.c.bf16 %v1821_v48, %v1820_v20 }
 0x146   : > { %v1420_v53 = vpop.f32.mrf.mxu2 }
 0x147   : > { %1858 = vst [vmem:[%s3549_s20 + $0x50] sm:$0xff] %v1842_v21  ;;  %v1421_v54 = vadd.f32 %v1420_v53, %v1392_v34  ;;  %v1449_v22 = vpop.f32.mrf.mxu3  ;;  %v1364_v23 = vpop.f32.mrf.mxu0 }
 0x148   : > { %v1393_v16 = vpop.f32.mrf.mxu1 }
 0x149   : > { %v1450_v24 = vadd.f32 %v1449_v22, %v1421_v54  ;;  %v1394_v25 = vadd.f32 %v1393_v16, %v1364_v23 }
 0x14b   : > { %v1825_v57 = vadd.f32 %v3543_v15, %v1450_v24 }
 0x14d   : > { %v1844_v17 = vpack.c.bf16 %v1825_v57, %v1824_v46 }
 0x14e   : > { %v1422_v27 = vpop.f32.mrf.mxu2 }
 0x14f   : > { %1860 = vst [vmem:[%s3549_s20 + $0x60] sm:$0xff] %v1844_v17  ;;  %v1423_v18 = vadd.f32 %v1422_v27, %v1394_v25  ;;  %v1451_v19 = vpop.f32.mrf.mxu3  ;;  %v1463_v28 = vpop.f32.mrf.mxu0 }
 0x150   : > { %v1492_v30 = vpop.f32.mrf.mxu1 }
 0x151   : > { %v1452_v6 = vadd.f32 %v1451_v19, %v1423_v18  ;;  %v1493_v31 = vadd.f32 %v1492_v30, %v1463_v28  ;;  %v1790_v19 = vperm.slane %v3531_v1, 4  ;;  %v1791_v30 = vperm.slane %v3531_v1, 6 }
 0x153   : > { %v1829_v33 = vadd.f32 %v3543_v15, %v1452_v6 }
 0x155   : > { %v1846_v35 = vpack.c.bf16 %v1829_v33, %v1828_v32 }
 0x156   : > { %v1521_v61 = vpop.f32.mrf.mxu2 }
 0x157   : > { %1862 = vst [vmem:[%s3549_s20 + $0x70] sm:$0xff] %v1846_v35  ;;  %v1522_v40 = vadd.f32 %v1521_v61, %v1493_v31  ;;  %v1550_v41 = vpop.f32.mrf.mxu3  ;;  %v1465_v42 = vpop.f32.mrf.mxu0  ;;  %v3608_v31 = vperm.slane %v1790_v19, 0  ;;  %v3610_v35 = vperm.slane %v1791_v30, 0 }
 0x158   : > { %v1494_v44 = vpop.f32.mrf.mxu1 }
 0x159   : > { %v1551_v43 = vadd.f32 %v1550_v41, %v1522_v40  ;;  %v1495_v29 = vadd.f32 %v1494_v44, %v1465_v42 }
 0x15b   : > { %v1802_v42 = vadd.f32 %v3608_v31, %v1551_v43 }
 0x15e   : > { %v1523_v45 = vpop.f32.mrf.mxu2 }
 0x15f   : > { %v1524_v47 = vadd.f32 %v1523_v45, %v1495_v29  ;;  %v1552_v50 = vpop.f32.mrf.mxu3  ;;  %v1468_v49 = vpop.f32.mrf.mxu0 }
 0x160   : > { %v1497_v51 = vpop.f32.mrf.mxu1 }
 0x161   : > { %v3592_v56 = vadd.f32 %v1552_v50, %v1524_v47  ;;  %v1498_v52 = vadd.f32 %v1497_v51, %v1468_v49 }
 0x166   : > { %v1526_v7 = vpop.f32.mrf.mxu2 }
 0x167   : > { %v1527_v12 = vadd.f32 %v1526_v7, %v1498_v52  ;;  %v1555_v15 = vpop.f32.mrf.mxu3  ;;  %v1470_v55 = vpop.f32.mrf.mxu0  ;;  %v1806_v7 = vadd.f32 %v3608_v31, %v3592_v56 }
 0x168   : > { %v1499_v58 = vpop.f32.mrf.mxu1 }
 0x169   : > { %v3594_v59 = vadd.f32 %v1555_v15, %v1527_v12  ;;  %v1500_v62 = vadd.f32 %v1499_v58, %v1470_v55 }
 0x16e   : > { %v1528_v60 = vpop.f32.mrf.mxu2 }
 0x16f   : > { %v1529_v63 = vadd.f32 %v1528_v60, %v1500_v62  ;;  %v1557_v0 = vpop.f32.mrf.mxu3  ;;  %v1473_v2 = vpop.f32.mrf.mxu0 }
 0x170   : > { %v1502_v3 = vpop.f32.mrf.mxu1 }
 0x171   : > { %v3596_v4 = vadd.f32 %v1557_v0, %v1529_v63  ;;  %v1503_v36 = vadd.f32 %v1502_v3, %v1473_v2  ;;  %v1810_v2 = vadd.f32 %v3608_v31, %v3594_v59 }
 0x176   : > { %v1531_v5 = vpop.f32.mrf.mxu2 }
 0x177   : > { %v1532_v26 = vadd.f32 %v1531_v5, %v1503_v36  ;;  %v1560_v8 = vpop.f32.mrf.mxu3  ;;  %v1475_v9 = vpop.f32.mrf.mxu0 }
 0x178   : > { %v1504_v37 = vpop.f32.mrf.mxu1 }
 0x179   : > { %v3598_v10 = vadd.f32 %v1560_v8, %v1532_v26  ;;  %v1505_v38 = vadd.f32 %v1504_v37, %v1475_v9 }
 0x17e   : > { %v1533_v39 = vpop.f32.mrf.mxu2 }
 0x17f   : > { %v1534_v11 = vadd.f32 %v1533_v39, %v1505_v38  ;;  %v1562_v13 = vpop.f32.mrf.mxu3  ;;  %v1478_v14 = vpop.f32.mrf.mxu0  ;;  %v1814_v39 = vadd.f32 %v3608_v31, %v3596_v4 }
 0x180   : > { %v1507_v20 = vpop.f32.mrf.mxu1 }
 0x181   : > { %v3600_v48 = vadd.f32 %v1562_v13, %v1534_v11  ;;  %v1508_v34 = vadd.f32 %v1507_v20, %v1478_v14 }
 0x186   : > { %v1536_v21 = vpop.f32.mrf.mxu2 }
 0x187   : > { %v1537_v53 = vadd.f32 %v1536_v21, %v1508_v34  ;;  %v1565_v54 = vpop.f32.mrf.mxu3  ;;  %v1480_v22 = vpop.f32.mrf.mxu0 }
 0x188   : > { %v1509_v23 = vpop.f32.mrf.mxu1 }
 0x189   : > { %v3602_v16 = vadd.f32 %v1565_v54, %v1537_v53  ;;  %v1510_v24 = vadd.f32 %v1509_v23, %v1480_v22  ;;  %v1818_v22 = vadd.f32 %v3608_v31, %v3598_v10 }
 0x18e   : > { %v1538_v46 = vpop.f32.mrf.mxu2 }
 0x18f   : > { %v1539_v57 = vadd.f32 %v1538_v46, %v1510_v24  ;;  %v1567_v17 = vpop.f32.mrf.mxu3  ;;  %v1579_v25 = vpop.f32.mrf.mxu0 }
 0x190   : > { %v1608_v27 = vpop.f32.mrf.mxu1 }
 0x191   : > { %v3604_v18 = vadd.f32 %v1567_v17, %v1539_v57  ;;  %v1609_v28 = vadd.f32 %v1608_v27, %v1579_v25 }
 0x196   : > { %v1637_v6 = vpop.f32.mrf.mxu2 }
 0x197   : > { %v1638_v32 = vadd.f32 %v1637_v6, %v1609_v28  ;;  %v1666_v33 = vpop.f32.mrf.mxu3  ;;  %v1581_v61 = vpop.f32.mrf.mxu0  ;;  %v1822_v28 = vadd.f32 %v3608_v31, %v3600_v48 }
 0x198   : > { %v1610_v40 = vpop.f32.mrf.mxu1 }
 0x199   : > { %v1667_v41 = vadd.f32 %v1666_v33, %v1638_v32  ;;  %v1611_v45 = vadd.f32 %v1610_v40, %v1581_v61 }
 0x19b   : > { %v1803_v44 = vadd.f32 %v3610_v35, %v1667_v41 }
 0x19d   : > { %v1833_v29 = vpack.c.bf16 %v1803_v44, %v1802_v42  ;;  %v1826_v44 = vadd.f32 %v3608_v31, %v3602_v16  ;;  %v1830_v16 = vadd.f32 %v3608_v31, %v3604_v18 }
 0x19e   : > { %v1639_v47 = vpop.f32.mrf.mxu2 }
 0x19f   : > { %1849 = vst [vmem:[%s3549_s20 + $0x8] sm:$0xff] %v1833_v29  ;;  %v1640_v1 = vadd.f32 %v1639_v47, %v1611_v45  ;;  %v1668_v50 = vpop.f32.mrf.mxu3  ;;  %v1584_v49 = vpop.f32.mrf.mxu0 }
 0x1a0   : > { %v1613_v51 = vpop.f32.mrf.mxu1 }
 0x1a1   : > { %v1669_v52 = vadd.f32 %v1668_v50, %v1640_v1  ;;  %v1614_v15 = vadd.f32 %v1613_v51, %v1584_v49 }
 0x1a3   : > { %v1807_v12 = vadd.f32 %v3610_v35, %v1669_v52 }
 0x1a5   : > { %v1835_v43 = vpack.c.bf16 %v1807_v12, %v1806_v7 }
 0x1a6   : > { %v1642_v55 = vpop.f32.mrf.mxu2 }
 0x1a7   : > { %1851 = vst [vmem:[%s3549_s20 + $0x18] sm:$0xff] %v1835_v43  ;;  %v1643_v58 = vadd.f32 %v1642_v55, %v1614_v15  ;;  %v1671_v62 = vpop.f32.mrf.mxu3  ;;  %v1586_v60 = vpop.f32.mrf.mxu0 }
 0x1a8   : > { %v1615_v63 = vpop.f32.mrf.mxu1 }
 0x1a9   : > { %v1672_v0 = vadd.f32 %v1671_v62, %v1643_v58  ;;  %v1616_v56 = vadd.f32 %v1615_v63, %v1586_v60 }
 0x1ab   : > { %v1811_v3 = vadd.f32 %v3610_v35, %v1672_v0 }
 0x1ad   : > { %v1837_v36 = vpack.c.bf16 %v1811_v3, %v1810_v2 }
 0x1ae   : > { %v1644_v5 = vpop.f32.mrf.mxu2 }
 0x1af   : > { %1853 = vst [vmem:[%s3549_s20 + $0x28] sm:$0xff] %v1837_v36  ;;  %v1645_v26 = vadd.f32 %v1644_v5, %v1616_v56  ;;  %v1673_v8 = vpop.f32.mrf.mxu3  ;;  %v1589_v9 = vpop.f32.mrf.mxu0 }
 0x1b0   : > { %v1618_v37 = vpop.f32.mrf.mxu1 }
 0x1b1   : > { %v1674_v38 = vadd.f32 %v1673_v8, %v1645_v26  ;;  %v1619_v13 = vadd.f32 %v1618_v37, %v1589_v9 }
 0x1b3   : > { %v1815_v11 = vadd.f32 %v3610_v35, %v1674_v38 }
 0x1b5   : > { %v1839_v59 = vpack.c.bf16 %v1815_v11, %v1814_v39 }
 0x1b6   : > { %v1647_v14 = vpop.f32.mrf.mxu2 }
 0x1b7   : > { %1855 = vst [vmem:[%s3549_s20 + $0x38] sm:$0xff] %v1839_v59  ;;  %v1648_v20 = vadd.f32 %v1647_v14, %v1619_v13  ;;  %v1676_v34 = vpop.f32.mrf.mxu3  ;;  %v1591_v21 = vpop.f32.mrf.mxu0 }
 0x1b8   : > { %v1620_v53 = vpop.f32.mrf.mxu1 }
 0x1b9   : > { %v1677_v54 = vadd.f32 %v1676_v34, %v1648_v20  ;;  %v1621_v4 = vadd.f32 %v1620_v53, %v1591_v21 }
 0x1bb   : > { %v1819_v23 = vadd.f32 %v3610_v35, %v1677_v54 }
 0x1bd   : > { %v1841_v24 = vpack.c.bf16 %v1819_v23, %v1818_v22 }
 0x1be   : > { %v1649_v46 = vpop.f32.mrf.mxu2 }
 0x1bf   : > { %1857 = vst [vmem:[%s3549_s20 + $0x48] sm:$0xff] %v1841_v24  ;;  %v1650_v57 = vadd.f32 %v1649_v46, %v1621_v4  ;;  %v1678_v17 = vpop.f32.mrf.mxu3  ;;  %v1594_v25 = vpop.f32.mrf.mxu0 }
 0x1c0   : > { %v1623_v27 = vpop.f32.mrf.mxu1 }
 0x1c1   : > { %v1679_v19 = vadd.f32 %v1678_v17, %v1650_v57  ;;  %v1624_v6 = vadd.f32 %v1623_v27, %v1594_v25 }
 0x1c3   : > { %v1823_v30 = vadd.f32 %v3610_v35, %v1679_v19 }
 0x1c5   : > { %v1843_v10 = vpack.c.bf16 %v1823_v30, %v1822_v28 }
 0x1c6   : > { %v1652_v32 = vpop.f32.mrf.mxu2 }
 0x1c7   : > { %1859 = vst [vmem:[%s3549_s20 + $0x58] sm:$0xff] %v1843_v10  ;;  %v1653_v33 = vadd.f32 %v1652_v32, %v1624_v6  ;;  %v1681_v61 = vpop.f32.mrf.mxu3  ;;  %v1596_v41 = vpop.f32.mrf.mxu0 }
 0x1c8   : > { %v1625_v42 = vpop.f32.mrf.mxu1 }
 0x1c9   : > { %v1682_v40 = vadd.f32 %v1681_v61, %v1653_v33  ;;  %v1626_v45 = vadd.f32 %v1625_v42, %v1596_v41 }
 0x1cb   : > { %v1827_v29 = vadd.f32 %v3610_v35, %v1682_v40 }
 0x1cd   : > { %v1845_v48 = vpack.c.bf16 %v1827_v29, %v1826_v44 }
 0x1ce   : > { %v1654_v47 = vpop.f32.mrf.mxu2 }
 0x1cf   : > { %1861 = vst [vmem:[%s3549_s20 + $0x68] sm:$0xff] %v1845_v48  ;;  %v1655_v1 = vadd.f32 %v1654_v47, %v1626_v45  ;;  %v1683_v50 = vpop.f32.mrf.mxu3 }
 0x1d1   : > { %v1684_v49 = vadd.f32 %v1683_v50, %v1655_v1 }
 0x1d3   : > { %v1831_v51 = vadd.f32 %v3610_v35, %v1684_v49 }
 0x1d5   : > { %v1847_v52 = vpack.c.bf16 %v1831_v51, %v1830_v16 }
 0x1d7   : > { %1863 = vst [vmem:[%s3549_s20 + $0x78] sm:$0xff] %v1847_v52 }
 0x1d8   : > { %2953 = shalt.err (!%p2950_p13)
}
 0x1d9   : > { %s3018_s9 = smov 256   ;;  %s3019_s6 = smov 512  }
 0x1da   : > { %s3020_s7 = smov 16  }
 0x1db   : > { %2760 = dma.vmem_to_hbm [thread:$0]  (%p3131_p0), %s1881_s4, 2048, %s1883_s5, %s1865_s15, %s3018_s9, %s3019_s6, %s3020_s7  }
 0x1dc PF: > { %s1897_s10 = sand.u32 1, %s2992_s12   ;;  %p2774_p3 = pnand %p2014_p4, %p3135_p2 }
 0x1dd   : > { %s1898_s11 = scalar_lea.sflag [#allocation5], %s1897_s10 }
 0x1de   : > { %p2775_p5 = pneg %p2774_p3 }
 0x1e0   : > { %2987 = dma.done.wait (%p2775_p5), %s1898_s11, 2048  }
 0x1e1   : > { %2989 = vsyncadd (%p2775_p5), %s1898_s11, 4294965248  ;;  %s20_s17 = sadd.s32 1, %s3012_s17   ;;  %s3700_s12 = smov %s2996_s13 }
 0x1e2   : > { %p17_p1 = scmp.ge.s32.totalorder %s20_s17, 4   ;;  %s3701_s13 = smov %s3000_s14 }
 0x1e3   : > { %s3702_s14 = smov %s3092_s24  ;;  %s3703_s15 = smov %s3008_s16 }
 0x1e4   : > { %s3704_s16 = smov %s3706_s18  ;;  %19 = sbr.rel (!%p17_p1) target bundleno = 10 (0xa), region = 102 }
 0x1e9   :  { %1904 = vsyncpa [#allocation4], 1 }
 0x1ea   :  { %1906 = vsyncpa [#allocation4 + $0x1], 1 }
 0x1eb   :  { %1907 = vsyncpa [#allocation7], 1 }
 0x1ec   :  { %1909 = vsyncpa [#allocation7 + $0x1], 1 }
 0x1ed   :  { %1910 = vsyncpa [#allocation5], 1 }
 0x1ee   :  { %1912 = vsyncpa [#allocation5 + $0x1], 1 }

</bundles_post_ra>
